<compile_context>
chip_gen: v6e
topology: v6e:2x2x1
jax: 0.10.0
libtpu: 0.0.40
codegen_flags: <defaults>
</compile_context>

<pallas_src>
import functools

import jax
import jax.numpy as jnp
from jax import lax
from jax.experimental import pallas as pl
from jax.experimental.pallas import tpu as pltpu


# ------------------------------ fused tagger kernel ------------------------------

def _sigmoid(x):
    # sigmoid(x) == 0.5 * (tanh(0.5 * x) + 1): one EUP tanh + a cheap VPU fma
    # instead of exp + divide on the serial recurrent chain.
    return 0.5 * jnp.tanh(0.5 * x) + 0.5


def _lstm_cell(gates, c_prev, h_stride):
    """PyTorch gate order i, f, g, o; each gate occupies an h_stride-lane slab.

    Exact zero-padding invariant: padded gate lanes are 0 (zero bias padding, zero weight
    columns), so i/f/o = 0.5 and g = tanh(0) = 0 there; with c initialised to 0 the padded
    lanes of c and h stay exactly 0 for every step.  This relies on zero initial states and
    zero bias padding -- do not change those without revisiting the padding argument.
    """
    i = _sigmoid(gates[:, 0 * h_stride:1 * h_stride])
    f = _sigmoid(gates[:, 1 * h_stride:2 * h_stride])
    g = jnp.tanh(gates[:, 2 * h_stride:3 * h_stride])
    o = _sigmoid(gates[:, 3 * h_stride:4 * h_stride])
    c_new = f * c_prev + i * g
    h_new = o * jnp.tanh(c_new)
    return h_new, c_new


def tagger_kernel(xc_ref, lens_ref, wihc_ref, whhc_ref, bc_ref,
                  wv_ref, wihw_word_ref, wihw_char_ref, whhw_ref, bw_ref,
                  wcls_ref, bcls_ref,
                  out_ref,
                  *, max_char_len, seq_len, w_pad,
                  char_hidden, word_hidden, hc_stride, hw_stride):
    f32 = jnp.float32

    # ---------------- char LSTM: all words batched on the sublane axis ----------------
    # Hoisted input projection: one (T*W, char_dim) @ (char_dim, 4*hc_stride) matmul (+bias).
    # Only 6 vregs -> kept in registers, no VMEM scratch.
    gxc = jnp.dot(xc_ref[...], wihc_ref[...], preferred_element_type=f32) + bc_ref[...]
    lens = lens_ref[...]                                   # (w_pad, 1) word lengths (f32)

    h_c = jnp.zeros((w_pad, hc_stride), f32)
    c_c = jnp.zeros((w_pad, hc_stride), f32)
    for t in range(max_char_len):                          # static trip count -> fully unrolled
        gates = (gxc[t * w_pad:(t + 1) * w_pad, :]
                 + jnp.dot(h_c[:, :char_hidden], whhc_ref[...], preferred_element_type=f32))
        h_new, c_new = _lstm_cell(gates, c_c, hc_stride)
        active = lens > float(t)                           # (w_pad, 1); freeze finished words
        h_c = jnp.where(active, h_new, h_c)                # freeze BOTH h and c
        c_c = jnp.where(active, c_new, c_c)
    # h_c: final char hidden state per word (padded lanes / padded words are exactly 0)

    # -------- word LSTM: split input projection (word part + char part), no concat ----
    gxw = (jnp.dot(wv_ref[...], wihw_word_ref[...], preferred_element_type=f32)
           + jnp.dot(h_c[:, :char_hidden], wihw_char_ref[...], preferred_element_type=f32)
           + bw_ref[...])                                  # (w_pad, 4*hw_stride) = 1 vreg

    h_w = jnp.zeros((1, hw_stride), f32)
    c_w = jnp.zeros((1, hw_stride), f32)
    h_rows = []
    for t in range(seq_len):                               # static trip count -> fully unrolled
        gates = (gxw[t:t + 1, :]
                 + jnp.dot(h_w[:, :word_hidden], whhw_ref[...], preferred_element_type=f32))
        h_w, c_w = _lstm_cell(gates, c_w, hw_stride)
        h_rows.append(h_w)
    if w_pad > seq_len:
        h_rows.append(jnp.zeros((w_pad - seq_len, hw_stride), f32))
    h_all = jnp.concatenate(h_rows, axis=0)                # (w_pad, hw_stride), stays in vregs

    # -------- classifier over all timesteps: one matmul, lane-dense (8,128) store -----
    out_ref[...] = (jnp.dot(h_all[:, :word_hidden], wcls_ref[...], preferred_element_type=f32)
                    + bcls_ref[...])


def run_lstm_tagger(xc2d, lens_col, wihc, whhc, bc,
                    word_vec, wihw_word, wihw_char, whhw, bw,
                    wcls, bcls,
                    *, max_char_len, seq_len, w_pad,
                    char_hidden, word_hidden, hc_stride, hw_stride, n_tag_pad):
    def full2d(arr):
        return pl.BlockSpec(arr.shape, lambda i: (0, 0))

    kernel = functools.partial(
        tagger_kernel, max_char_len=max_char_len, seq_len=seq_len, w_pad=w_pad,
        char_hidden=char_hidden, word_hidden=word_hidden,
        hc_stride=hc_stride, hw_stride=hw_stride)

    args = (xc2d, lens_col, wihc, whhc, bc,
            word_vec, wihw_word, wihw_char, whhw, bw, wcls, bcls)

    # TODO(synk): for multi-sentence batches, add a leading "parallel" grid axis (constant
    # index_map on the weights keeps them VMEM-resident) to use both TCs on v7x.
    return pl.pallas_call(
        kernel,
        out_shape=jax.ShapeDtypeStruct((w_pad, n_tag_pad), jnp.float32),
        grid=(1,),
        in_specs=[full2d(a) for a in args],
        out_specs=pl.BlockSpec((w_pad, n_tag_pad), lambda i: (0, 0)),
        compiler_params=pltpu.CompilerParams(dimension_semantics=("arbitrary",)),
    )(*args)


# ------------------- weight packing (gate-strided lanes, real K dims) -------------------

def pack_lstm_params(w_ih, w_hh, b_ih, b_hh, hidden, h_stride):
    """PyTorch (4H,in),(4H,H),(4H,) -> (in,4*h_stride),(H,4*h_stride),(1,4*h_stride).

    Gate g's real units sit at lanes [g*h_stride, g*h_stride+hidden); remaining lanes are 0.
    Contraction (row) dims are the REAL sizes (no zero rows), so weight DMA carries no padding;
    the kernel slices the matmul LHS to the matching offset-0 lanes."""
    in_dim = w_ih.shape[1]
    w_ih_p = jnp.zeros((in_dim, 4 * h_stride), jnp.float32)
    w_hh_p = jnp.zeros((hidden, 4 * h_stride), jnp.float32)
    b_p = jnp.zeros((1, 4 * h_stride), jnp.float32)
    b = b_ih + b_hh
    for g in range(4):
        w_ih_p = w_ih_p.at[:, g * h_stride:g * h_stride + hidden].set(
            w_ih[g * hidden:(g + 1) * hidden, :].T)
        w_hh_p = w_hh_p.at[:, g * h_stride:g * h_stride + hidden].set(
            w_hh[g * hidden:(g + 1) * hidden, :].T)
        b_p = b_p.at[0, g * h_stride:g * h_stride + hidden].set(b[g * hidden:(g + 1) * hidden])
    return w_ih_p, w_hh_p, b_p


# --------------------------- pure-JAX reference (check) --------------------------

def lstm_ref(x_seq, w_ih, w_hh, b_ih, b_hh, hidden):
    hp = lax.Precision.HIGHEST

    def step(carry, x_t):
        h, c = carry
        gates = (jnp.dot(x_t, w_ih.T, precision=hp) + b_ih
                 + jnp.dot(h, w_hh.T, precision=hp) + b_hh)
        i, f, g, o = jnp.split(gates, 4)
        i, f, o = jax.nn.sigmoid(i), jax.nn.sigmoid(f), jax.nn.sigmoid(o)
        g = jnp.tanh(g)
        c = f * c + i * g
        h = o * jnp.tanh(c)
        return (h, c), h

    (_, _), hs = lax.scan(step, (jnp.zeros(hidden), jnp.zeros(hidden)), x_seq)
    return hs


# ------------------------------------- main --------------------------------------

if __name__ == "__main__":
    sent = "The dog ate the banana"
    words = [w.lower() for w in sent.split()]

    word_to_idx = {}
    for w in words:
        if w not in word_to_idx:
            word_to_idx[w] = len(word_to_idx)
    char_to_idx = {}
    for w in words:
        for ch in w:
            if ch not in char_to_idx:
                char_to_idx[ch] = len(char_to_idx)

    n_word = len(word_to_idx)
    n_char = len(char_to_idx)
    char_dim, word_dim = 8, 16
    char_hidden, word_hidden = 8, 16
    n_tag = 5
    seq_len = len(words)
    max_char_len = max(len(w) for w in words)
    feat = word_dim + char_hidden

    # padded / packed sizes used inside the kernel
    W_PAD = ((seq_len + 7) // 8) * 8      # words / timesteps padded to a sublane multiple
    HC_STRIDE, HW_STRIDE = 32, 32         # gate lane stride: 4 gates * 32 = one 128-lane slab
    N_TAG_PAD = 128                       # lane-dense output store

    # ---- deterministic parameter init (PyTorch-default-like distributions) ----
    key = jax.random.PRNGKey(0)
    ks = iter(jax.random.split(key, 16))

    def uniform(k, shape, bound):
        return jax.random.uniform(k, shape, jnp.float32, -bound, bound)

    char_embed = jax.random.normal(next(ks), (n_char, char_dim), jnp.float32)
    word_embed = jax.random.normal(next(ks), (n_word, word_dim), jnp.float32)

    bnd_c = char_hidden ** -0.5
    c_w_ih = uniform(next(ks), (4 * char_hidden, char_dim), bnd_c)
    c_w_hh = uniform(next(ks), (4 * char_hidden, char_hidden), bnd_c)
    c_b_ih = uniform(next(ks), (4 * char_hidden,), bnd_c)
    c_b_hh = uniform(next(ks), (4 * char_hidden,), bnd_c)

    bnd_w = word_hidden ** -0.5
    w_w_ih = uniform(next(ks), (4 * word_hidden, feat), bnd_w)
    w_w_hh = uniform(next(ks), (4 * word_hidden, word_hidden), bnd_w)
    w_b_ih = uniform(next(ks), (4 * word_hidden,), bnd_w)
    w_b_hh = uniform(next(ks), (4 * word_hidden,), bnd_w)

    cls_w = uniform(next(ks), (n_tag, word_hidden), bnd_w)
    cls_b = uniform(next(ks), (n_tag,), bnd_w)

    # ---- inputs ----
    word_idx = jnp.array([[word_to_idx[w] for w in words]], dtype=jnp.int32)     # (1, seq_len)
    char_idx_padded = jnp.array(
        [[char_to_idx[c] for c in w] + [0] * (max_char_len - len(w)) for w in words],
        dtype=jnp.int32)                                                         # (seq_len, max_char_len)
    char_lens = jnp.array([len(w) for w in words], dtype=jnp.float32)            # (seq_len,)

    # ---- JAX glue: embedding gathers + time-major / padded layouts ----
    char_emb = char_embed[char_idx_padded]                       # (seq_len, max_char_len, char_dim)
    char_emb_tm = jnp.transpose(char_emb, (1, 0, 2))             # (max_char_len, seq_len, char_dim)
    char_emb_tm = jnp.pad(char_emb_tm, ((0, 0), (0, W_PAD - seq_len), (0, 0)))
    xc2d = char_emb_tm.reshape(max_char_len * W_PAD, char_dim)   # rows grouped per timestep

    lens_col = jnp.pad(char_lens, (0, W_PAD - seq_len)).reshape(W_PAD, 1)  # padded words -> len 0

    word_vec = jnp.transpose(word_embed[word_idx], (1, 0, 2))[:, 0, :]     # permute(1,0,2), squeeze b=1
    word_vec = jnp.pad(word_vec, ((0, W_PAD - seq_len), (0, 0)))           # (W_PAD, word_dim)

    # ---- packed / split weights (gate-strided lanes, real-size contraction dims) ----
    wihc_p, whhc_p, bc_p = pack_lstm_params(c_w_ih, c_w_hh, c_b_ih, c_b_hh, char_hidden, HC_STRIDE)
    wihw_p, whhw_p, bw_p = pack_lstm_params(w_w_ih, w_w_hh, w_b_ih, w_b_hh, word_hidden, HW_STRIDE)
    wihw_word = wihw_p[:word_dim, :]                             # (word_dim,   4*HW_STRIDE)
    wihw_char = wihw_p[word_dim:, :]                             # (char_hidden, 4*HW_STRIDE)
    wcls_p = jnp.zeros((word_hidden, N_TAG_PAD), jnp.float32).at[:, :n_tag].set(cls_w.T)
    bcls_p = jnp.zeros((1, N_TAG_PAD), jnp.float32).at[0, :n_tag].set(cls_b)

    # ---- fused forward pass (single pallas_call, no scratch) ----
    out_pad = run_lstm_tagger(
        xc2d, lens_col, wihc_p, whhc_p, bc_p,
        word_vec, wihw_word, wihw_char, whhw_p, bw_p,
        wcls_p, bcls_p,
        max_char_len=max_char_len, seq_len=seq_len, w_pad=W_PAD,
        char_hidden=char_hidden, word_hidden=word_hidden,
        hc_stride=HC_STRIDE, hw_stride=HW_STRIDE, n_tag_pad=N_TAG_PAD)
    out = out_pad[:seq_len, :n_tag]                               # (seq_len, n_tag)
    out = jax.block_until_ready(out)

    # ---- pure-JAX reference of the exact PyTorch forward semantics ----
    char_feats_r = []
    for w in words:
        idx = jnp.array([char_to_idx[c] for c in w], dtype=jnp.int32)
        hs = lstm_ref(char_embed[idx], c_w_ih, c_w_hh, c_b_ih, c_b_hh, char_hidden)
        char_feats_r.append(hs[-1])
    char_feat_r = jnp.stack(char_feats_r, axis=0)
    x_r = jnp.concatenate([word_embed[word_idx][0], char_feat_r], axis=-1)
    hs_r = lstm_ref(x_r, w_w_ih, w_w_hh, w_b_ih, w_b_hh, word_hidden)
    ref = jnp.dot(hs_r, cls_w.T, precision=lax.Precision.HIGHEST) + cls_b

    assert out.shape == (seq_len, n_tag)
    assert jnp.allclose(out, ref, atol=5e-4, rtol=5e-4), (
        "mismatch vs reference: max abs diff = %r" % float(jnp.max(jnp.abs(out - ref))))

    print("KERNEL_OK")
</pallas_src>

<mosaic_0001>
module attributes {stable_mosaic.version = 11 : i64} {
  func.func @tagger_kernel(%arg0: i32, %arg1: memref<48x8xf32, #tpu.memory_space<vmem>>, %arg2: memref<8x1xf32, #tpu.memory_space<vmem>>, %arg3: memref<8x128xf32, #tpu.memory_space<vmem>>, %arg4: memref<8x128xf32, #tpu.memory_space<vmem>>, %arg5: memref<1x128xf32, #tpu.memory_space<vmem>>, %arg6: memref<8x16xf32, #tpu.memory_space<vmem>>, %arg7: memref<16x128xf32, #tpu.memory_space<vmem>>, %arg8: memref<8x128xf32, #tpu.memory_space<vmem>>, %arg9: memref<16x128xf32, #tpu.memory_space<vmem>>, %arg10: memref<1x128xf32, #tpu.memory_space<vmem>>, %arg11: memref<16x128xf32, #tpu.memory_space<vmem>>, %arg12: memref<1x128xf32, #tpu.memory_space<vmem>>, %arg13: memref<8x128xf32, #tpu.memory_space<vmem>>) attributes {dimension_semantics = [#tpu.dimension_semantics<arbitrary>], iteration_bounds = array<i64: 1>, scalar_prefetch = 0 : i64, scratch_operands = 0 : i64, tpu.core_type = #tpu.core_type<tc>, window_params = [{pipeline_mode = #tpu.pipeline_mode<synchronous>, transform_indices = @transform_0, window_bounds = array<i64: 48, 8>}, {pipeline_mode = #tpu.pipeline_mode<synchronous>, transform_indices = @transform_1, window_bounds = array<i64: 8, 1>}, {pipeline_mode = #tpu.pipeline_mode<synchronous>, transform_indices = @transform_2, window_bounds = array<i64: 8, 128>}, {pipeline_mode = #tpu.pipeline_mode<synchronous>, transform_indices = @transform_3, window_bounds = array<i64: 8, 128>}, {pipeline_mode = #tpu.pipeline_mode<synchronous>, transform_indices = @transform_4, window_bounds = array<i64: 1, 128>}, {pipeline_mode = #tpu.pipeline_mode<synchronous>, transform_indices = @transform_5, window_bounds = array<i64: 8, 16>}, {pipeline_mode = #tpu.pipeline_mode<synchronous>, transform_indices = @transform_6, window_bounds = array<i64: 16, 128>}, {pipeline_mode = #tpu.pipeline_mode<synchronous>, transform_indices = @transform_7, window_bounds = array<i64: 8, 128>}, {pipeline_mode = #tpu.pipeline_mode<synchronous>, transform_indices = @transform_8, window_bounds = array<i64: 16, 128>}, {pipeline_mode = #tpu.pipeline_mode<synchronous>, transform_indices = @transform_9, window_bounds = array<i64: 1, 128>}, {pipeline_mode = #tpu.pipeline_mode<synchronous>, transform_indices = @transform_10, window_bounds = array<i64: 16, 128>}, {pipeline_mode = #tpu.pipeline_mode<synchronous>, transform_indices = @transform_11, window_bounds = array<i64: 1, 128>}, {pipeline_mode = #tpu.pipeline_mode<synchronous>, transform_indices = @transform_12, window_bounds = array<i64: 8, 128>}]} {
    %c0 = arith.constant 0 : index
    %c0_0 = arith.constant 0 : index
    %0 = vector.load %arg1[%c0, %c0_0] : memref<48x8xf32, #tpu.memory_space<vmem>>, vector<48x8xf32>
    %c0_1 = arith.constant 0 : index
    %c0_2 = arith.constant 0 : index
    %1 = vector.load %arg3[%c0_1, %c0_2] : memref<8x128xf32, #tpu.memory_space<vmem>>, vector<8x128xf32>
    %cst = arith.constant dense<0.000000e+00> : vector<48x128xf32>
    %2 = tpu.matmul %0, %1, %cst {dimension_numbers = #tpu.dot_dimension_numbers<[1], [0], [0], [1], [0, 0, 1, 1], [], []>} : vector<48x8xf32>, vector<8x128xf32>, vector<48x128xf32> -> vector<48x128xf32>
    %c0_3 = arith.constant 0 : index
    %c0_4 = arith.constant 0 : index
    %3 = vector.load %arg5[%c0_3, %c0_4] : memref<1x128xf32, #tpu.memory_space<vmem>>, vector<1x128xf32>
    %4 = vector.broadcast %3 : vector<1x128xf32> to vector<48x128xf32>
    %5 = arith.addf %2, %4 : vector<48x128xf32>
    %c0_5 = arith.constant 0 : index
    %c0_6 = arith.constant 0 : index
    %6 = vector.load %arg2[%c0_5, %c0_6] : memref<8x1xf32, #tpu.memory_space<vmem>>, vector<8x1xf32>
    %cst_7 = arith.constant 0.000000e+00 : f32
    %7 = vector.broadcast %cst_7 : f32 to vector<8x32xf32>
    %cst_8 = arith.constant 0.000000e+00 : f32
    %8 = vector.broadcast %cst_8 : f32 to vector<8x32xf32>
    %9 = vector.extract_strided_slice %5 {offsets = [0, 0], sizes = [8, 128], strides = [1, 1]} : vector<48x128xf32> to vector<8x128xf32>
    %10 = vector.extract_strided_slice %7 {offsets = [0, 0], sizes = [8, 8], strides = [1, 1]} : vector<8x32xf32> to vector<8x8xf32>
    %c0_9 = arith.constant 0 : index
    %c0_10 = arith.constant 0 : index
    %11 = vector.load %arg4[%c0_9, %c0_10] : memref<8x128xf32, #tpu.memory_space<vmem>>, vector<8x128xf32>
    %cst_11 = arith.constant dense<0.000000e+00> : vector<8x128xf32>
    %12 = tpu.matmul %10, %11, %cst_11 {dimension_numbers = #tpu.dot_dimension_numbers<[1], [0], [0], [1], [0, 0, 1, 1], [], []>} : vector<8x8xf32>, vector<8x128xf32>, vector<8x128xf32> -> vector<8x128xf32>
    %13 = arith.addf %9, %12 : vector<8x128xf32>
    %14 = vector.extract_strided_slice %13 {offsets = [0, 0], sizes = [8, 32], strides = [1, 1]} : vector<8x128xf32> to vector<8x32xf32>
    %cst_12 = arith.constant 5.000000e-01 : f32
    %15 = vector.broadcast %cst_12 : f32 to vector<8x32xf32>
    %16 = arith.mulf %15, %14 : vector<8x32xf32>
    %17 = math.tanh %16 : vector<8x32xf32>
    %cst_13 = arith.constant 5.000000e-01 : f32
    %18 = vector.broadcast %cst_13 : f32 to vector<8x32xf32>
    %19 = arith.mulf %18, %17 : vector<8x32xf32>
    %cst_14 = arith.constant 5.000000e-01 : f32
    %20 = vector.broadcast %cst_14 : f32 to vector<8x32xf32>
    %21 = arith.addf %19, %20 : vector<8x32xf32>
    %22 = vector.extract_strided_slice %13 {offsets = [0, 32], sizes = [8, 32], strides = [1, 1]} : vector<8x128xf32> to vector<8x32xf32>
    %cst_15 = arith.constant 5.000000e-01 : f32
    %23 = vector.broadcast %cst_15 : f32 to vector<8x32xf32>
    %24 = arith.mulf %23, %22 : vector<8x32xf32>
    %25 = math.tanh %24 : vector<8x32xf32>
    %cst_16 = arith.constant 5.000000e-01 : f32
    %26 = vector.broadcast %cst_16 : f32 to vector<8x32xf32>
    %27 = arith.mulf %26, %25 : vector<8x32xf32>
    %cst_17 = arith.constant 5.000000e-01 : f32
    %28 = vector.broadcast %cst_17 : f32 to vector<8x32xf32>
    %29 = arith.addf %27, %28 : vector<8x32xf32>
    %30 = vector.extract_strided_slice %13 {offsets = [0, 64], sizes = [8, 32], strides = [1, 1]} : vector<8x128xf32> to vector<8x32xf32>
    %31 = math.tanh %30 : vector<8x32xf32>
    %32 = vector.extract_strided_slice %13 {offsets = [0, 96], sizes = [8, 32], strides = [1, 1]} : vector<8x128xf32> to vector<8x32xf32>
    %cst_18 = arith.constant 5.000000e-01 : f32
    %33 = vector.broadcast %cst_18 : f32 to vector<8x32xf32>
    %34 = arith.mulf %33, %32 : vector<8x32xf32>
    %35 = math.tanh %34 : vector<8x32xf32>
    %cst_19 = arith.constant 5.000000e-01 : f32
    %36 = vector.broadcast %cst_19 : f32 to vector<8x32xf32>
    %37 = arith.mulf %36, %35 : vector<8x32xf32>
    %cst_20 = arith.constant 5.000000e-01 : f32
    %38 = vector.broadcast %cst_20 : f32 to vector<8x32xf32>
    %39 = arith.addf %37, %38 : vector<8x32xf32>
    %40 = arith.mulf %29, %8 : vector<8x32xf32>
    %41 = arith.mulf %21, %31 : vector<8x32xf32>
    %42 = arith.addf %40, %41 : vector<8x32xf32>
    %43 = math.tanh %42 : vector<8x32xf32>
    %44 = arith.mulf %39, %43 : vector<8x32xf32>
    %cst_21 = arith.constant 0.000000e+00 : f32
    %45 = vector.broadcast %cst_21 : f32 to vector<8x1xf32>
    %46 = arith.cmpf ogt, %6, %45 : vector<8x1xf32>
    %47 = vector.shape_cast %46 : vector<8x1xi1> to vector<8x1xi1>
    %48 = vector.broadcast %47 : vector<8x1xi1> to vector<8x32xi1>
    %49 = arith.select %48, %44, %7 : vector<8x32xi1>, vector<8x32xf32>
    %50 = vector.shape_cast %46 : vector<8x1xi1> to vector<8x1xi1>
    %51 = vector.broadcast %50 : vector<8x1xi1> to vector<8x32xi1>
    %52 = arith.select %51, %42, %8 : vector<8x32xi1>, vector<8x32xf32>
    %53 = vector.extract_strided_slice %5 {offsets = [8, 0], sizes = [8, 128], strides = [1, 1]} : vector<48x128xf32> to vector<8x128xf32>
    %54 = vector.extract_strided_slice %49 {offsets = [0, 0], sizes = [8, 8], strides = [1, 1]} : vector<8x32xf32> to vector<8x8xf32>
    %c0_22 = arith.constant 0 : index
    %c0_23 = arith.constant 0 : index
    %55 = vector.load %arg4[%c0_22, %c0_23] : memref<8x128xf32, #tpu.memory_space<vmem>>, vector<8x128xf32>
    %cst_24 = arith.constant dense<0.000000e+00> : vector<8x128xf32>
    %56 = tpu.matmul %54, %55, %cst_24 {dimension_numbers = #tpu.dot_dimension_numbers<[1], [0], [0], [1], [0, 0, 1, 1], [], []>} : vector<8x8xf32>, vector<8x128xf32>, vector<8x128xf32> -> vector<8x128xf32>
    %57 = arith.addf %53, %56 : vector<8x128xf32>
    %58 = vector.extract_strided_slice %57 {offsets = [0, 0], sizes = [8, 32], strides = [1, 1]} : vector<8x128xf32> to vector<8x32xf32>
    %cst_25 = arith.constant 5.000000e-01 : f32
    %59 = vector.broadcast %cst_25 : f32 to vector<8x32xf32>
    %60 = arith.mulf %59, %58 : vector<8x32xf32>
    %61 = math.tanh %60 : vector<8x32xf32>
    %cst_26 = arith.constant 5.000000e-01 : f32
    %62 = vector.broadcast %cst_26 : f32 to vector<8x32xf32>
    %63 = arith.mulf %62, %61 : vector<8x32xf32>
    %cst_27 = arith.constant 5.000000e-01 : f32
    %64 = vector.broadcast %cst_27 : f32 to vector<8x32xf32>
    %65 = arith.addf %63, %64 : vector<8x32xf32>
    %66 = vector.extract_strided_slice %57 {offsets = [0, 32], sizes = [8, 32], strides = [1, 1]} : vector<8x128xf32> to vector<8x32xf32>
    %cst_28 = arith.constant 5.000000e-01 : f32
    %67 = vector.broadcast %cst_28 : f32 to vector<8x32xf32>
    %68 = arith.mulf %67, %66 : vector<8x32xf32>
    %69 = math.tanh %68 : vector<8x32xf32>
    %cst_29 = arith.constant 5.000000e-01 : f32
    %70 = vector.broadcast %cst_29 : f32 to vector<8x32xf32>
    %71 = arith.mulf %70, %69 : vector<8x32xf32>
    %cst_30 = arith.constant 5.000000e-01 : f32
    %72 = vector.broadcast %cst_30 : f32 to vector<8x32xf32>
    %73 = arith.addf %71, %72 : vector<8x32xf32>
    %74 = vector.extract_strided_slice %57 {offsets = [0, 64], sizes = [8, 32], strides = [1, 1]} : vector<8x128xf32> to vector<8x32xf32>
    %75 = math.tanh %74 : vector<8x32xf32>
    %76 = vector.extract_strided_slice %57 {offsets = [0, 96], sizes = [8, 32], strides = [1, 1]} : vector<8x128xf32> to vector<8x32xf32>
    %cst_31 = arith.constant 5.000000e-01 : f32
    %77 = vector.broadcast %cst_31 : f32 to vector<8x32xf32>
    %78 = arith.mulf %77, %76 : vector<8x32xf32>
    %79 = math.tanh %78 : vector<8x32xf32>
    %cst_32 = arith.constant 5.000000e-01 : f32
    %80 = vector.broadcast %cst_32 : f32 to vector<8x32xf32>
    %81 = arith.mulf %80, %79 : vector<8x32xf32>
    %cst_33 = arith.constant 5.000000e-01 : f32
    %82 = vector.broadcast %cst_33 : f32 to vector<8x32xf32>
    %83 = arith.addf %81, %82 : vector<8x32xf32>
    %84 = arith.mulf %73, %52 : vector<8x32xf32>
    %85 = arith.mulf %65, %75 : vector<8x32xf32>
    %86 = arith.addf %84, %85 : vector<8x32xf32>
    %87 = math.tanh %86 : vector<8x32xf32>
    %88 = arith.mulf %83, %87 : vector<8x32xf32>
    %cst_34 = arith.constant 1.000000e+00 : f32
    %89 = vector.broadcast %cst_34 : f32 to vector<8x1xf32>
    %90 = arith.cmpf ogt, %6, %89 : vector<8x1xf32>
    %91 = vector.shape_cast %90 : vector<8x1xi1> to vector<8x1xi1>
    %92 = vector.broadcast %91 : vector<8x1xi1> to vector<8x32xi1>
    %93 = arith.select %92, %88, %49 : vector<8x32xi1>, vector<8x32xf32>
    %94 = vector.shape_cast %90 : vector<8x1xi1> to vector<8x1xi1>
    %95 = vector.broadcast %94 : vector<8x1xi1> to vector<8x32xi1>
    %96 = arith.select %95, %86, %52 : vector<8x32xi1>, vector<8x32xf32>
    %97 = vector.extract_strided_slice %5 {offsets = [16, 0], sizes = [8, 128], strides = [1, 1]} : vector<48x128xf32> to vector<8x128xf32>
    %98 = vector.extract_strided_slice %93 {offsets = [0, 0], sizes = [8, 8], strides = [1, 1]} : vector<8x32xf32> to vector<8x8xf32>
    %c0_35 = arith.constant 0 : index
    %c0_36 = arith.constant 0 : index
    %99 = vector.load %arg4[%c0_35, %c0_36] : memref<8x128xf32, #tpu.memory_space<vmem>>, vector<8x128xf32>
    %cst_37 = arith.constant dense<0.000000e+00> : vector<8x128xf32>
    %100 = tpu.matmul %98, %99, %cst_37 {dimension_numbers = #tpu.dot_dimension_numbers<[1], [0], [0], [1], [0, 0, 1, 1], [], []>} : vector<8x8xf32>, vector<8x128xf32>, vector<8x128xf32> -> vector<8x128xf32>
    %101 = arith.addf %97, %100 : vector<8x128xf32>
    %102 = vector.extract_strided_slice %101 {offsets = [0, 0], sizes = [8, 32], strides = [1, 1]} : vector<8x128xf32> to vector<8x32xf32>
    %cst_38 = arith.constant 5.000000e-01 : f32
    %103 = vector.broadcast %cst_38 : f32 to vector<8x32xf32>
    %104 = arith.mulf %103, %102 : vector<8x32xf32>
    %105 = math.tanh %104 : vector<8x32xf32>
    %cst_39 = arith.constant 5.000000e-01 : f32
    %106 = vector.broadcast %cst_39 : f32 to vector<8x32xf32>
    %107 = arith.mulf %106, %105 : vector<8x32xf32>
    %cst_40 = arith.constant 5.000000e-01 : f32
    %108 = vector.broadcast %cst_40 : f32 to vector<8x32xf32>
    %109 = arith.addf %107, %108 : vector<8x32xf32>
    %110 = vector.extract_strided_slice %101 {offsets = [0, 32], sizes = [8, 32], strides = [1, 1]} : vector<8x128xf32> to vector<8x32xf32>
    %cst_41 = arith.constant 5.000000e-01 : f32
    %111 = vector.broadcast %cst_41 : f32 to vector<8x32xf32>
    %112 = arith.mulf %111, %110 : vector<8x32xf32>
    %113 = math.tanh %112 : vector<8x32xf32>
    %cst_42 = arith.constant 5.000000e-01 : f32
    %114 = vector.broadcast %cst_42 : f32 to vector<8x32xf32>
    %115 = arith.mulf %114, %113 : vector<8x32xf32>
    %cst_43 = arith.constant 5.000000e-01 : f32
    %116 = vector.broadcast %cst_43 : f32 to vector<8x32xf32>
    %117 = arith.addf %115, %116 : vector<8x32xf32>
    %118 = vector.extract_strided_slice %101 {offsets = [0, 64], sizes = [8, 32], strides = [1, 1]} : vector<8x128xf32> to vector<8x32xf32>
    %119 = math.tanh %118 : vector<8x32xf32>
    %120 = vector.extract_strided_slice %101 {offsets = [0, 96], sizes = [8, 32], strides = [1, 1]} : vector<8x128xf32> to vector<8x32xf32>
    %cst_44 = arith.constant 5.000000e-01 : f32
    %121 = vector.broadcast %cst_44 : f32 to vector<8x32xf32>
    %122 = arith.mulf %121, %120 : vector<8x32xf32>
    %123 = math.tanh %122 : vector<8x32xf32>
    %cst_45 = arith.constant 5.000000e-01 : f32
    %124 = vector.broadcast %cst_45 : f32 to vector<8x32xf32>
    %125 = arith.mulf %124, %123 : vector<8x32xf32>
    %cst_46 = arith.constant 5.000000e-01 : f32
    %126 = vector.broadcast %cst_46 : f32 to vector<8x32xf32>
    %127 = arith.addf %125, %126 : vector<8x32xf32>
    %128 = arith.mulf %117, %96 : vector<8x32xf32>
    %129 = arith.mulf %109, %119 : vector<8x32xf32>
    %130 = arith.addf %128, %129 : vector<8x32xf32>
    %131 = math.tanh %130 : vector<8x32xf32>
    %132 = arith.mulf %127, %131 : vector<8x32xf32>
    %cst_47 = arith.constant 2.000000e+00 : f32
    %133 = vector.broadcast %cst_47 : f32 to vector<8x1xf32>
    %134 = arith.cmpf ogt, %6, %133 : vector<8x1xf32>
    %135 = vector.shape_cast %134 : vector<8x1xi1> to vector<8x1xi1>
    %136 = vector.broadcast %135 : vector<8x1xi1> to vector<8x32xi1>
    %137 = arith.select %136, %132, %93 : vector<8x32xi1>, vector<8x32xf32>
    %138 = vector.shape_cast %134 : vector<8x1xi1> to vector<8x1xi1>
    %139 = vector.broadcast %138 : vector<8x1xi1> to vector<8x32xi1>
    %140 = arith.select %139, %130, %96 : vector<8x32xi1>, vector<8x32xf32>
    %141 = vector.extract_strided_slice %5 {offsets = [24, 0], sizes = [8, 128], strides = [1, 1]} : vector<48x128xf32> to vector<8x128xf32>
    %142 = vector.extract_strided_slice %137 {offsets = [0, 0], sizes = [8, 8], strides = [1, 1]} : vector<8x32xf32> to vector<8x8xf32>
    %c0_48 = arith.constant 0 : index
    %c0_49 = arith.constant 0 : index
    %143 = vector.load %arg4[%c0_48, %c0_49] : memref<8x128xf32, #tpu.memory_space<vmem>>, vector<8x128xf32>
    %cst_50 = arith.constant dense<0.000000e+00> : vector<8x128xf32>
    %144 = tpu.matmul %142, %143, %cst_50 {dimension_numbers = #tpu.dot_dimension_numbers<[1], [0], [0], [1], [0, 0, 1, 1], [], []>} : vector<8x8xf32>, vector<8x128xf32>, vector<8x128xf32> -> vector<8x128xf32>
    %145 = arith.addf %141, %144 : vector<8x128xf32>
    %146 = vector.extract_strided_slice %145 {offsets = [0, 0], sizes = [8, 32], strides = [1, 1]} : vector<8x128xf32> to vector<8x32xf32>
    %cst_51 = arith.constant 5.000000e-01 : f32
    %147 = vector.broadcast %cst_51 : f32 to vector<8x32xf32>
    %148 = arith.mulf %147, %146 : vector<8x32xf32>
    %149 = math.tanh %148 : vector<8x32xf32>
    %cst_52 = arith.constant 5.000000e-01 : f32
    %150 = vector.broadcast %cst_52 : f32 to vector<8x32xf32>
    %151 = arith.mulf %150, %149 : vector<8x32xf32>
    %cst_53 = arith.constant 5.000000e-01 : f32
    %152 = vector.broadcast %cst_53 : f32 to vector<8x32xf32>
    %153 = arith.addf %151, %152 : vector<8x32xf32>
    %154 = vector.extract_strided_slice %145 {offsets = [0, 32], sizes = [8, 32], strides = [1, 1]} : vector<8x128xf32> to vector<8x32xf32>
    %cst_54 = arith.constant 5.000000e-01 : f32
    %155 = vector.broadcast %cst_54 : f32 to vector<8x32xf32>
    %156 = arith.mulf %155, %154 : vector<8x32xf32>
    %157 = math.tanh %156 : vector<8x32xf32>
    %cst_55 = arith.constant 5.000000e-01 : f32
    %158 = vector.broadcast %cst_55 : f32 to vector<8x32xf32>
    %159 = arith.mulf %158, %157 : vector<8x32xf32>
    %cst_56 = arith.constant 5.000000e-01 : f32
    %160 = vector.broadcast %cst_56 : f32 to vector<8x32xf32>
    %161 = arith.addf %159, %160 : vector<8x32xf32>
    %162 = vector.extract_strided_slice %145 {offsets = [0, 64], sizes = [8, 32], strides = [1, 1]} : vector<8x128xf32> to vector<8x32xf32>
    %163 = math.tanh %162 : vector<8x32xf32>
    %164 = vector.extract_strided_slice %145 {offsets = [0, 96], sizes = [8, 32], strides = [1, 1]} : vector<8x128xf32> to vector<8x32xf32>
    %cst_57 = arith.constant 5.000000e-01 : f32
    %165 = vector.broadcast %cst_57 : f32 to vector<8x32xf32>
    %166 = arith.mulf %165, %164 : vector<8x32xf32>
    %167 = math.tanh %166 : vector<8x32xf32>
    %cst_58 = arith.constant 5.000000e-01 : f32
    %168 = vector.broadcast %cst_58 : f32 to vector<8x32xf32>
    %169 = arith.mulf %168, %167 : vector<8x32xf32>
    %cst_59 = arith.constant 5.000000e-01 : f32
    %170 = vector.broadcast %cst_59 : f32 to vector<8x32xf32>
    %171 = arith.addf %169, %170 : vector<8x32xf32>
    %172 = arith.mulf %161, %140 : vector<8x32xf32>
    %173 = arith.mulf %153, %163 : vector<8x32xf32>
    %174 = arith.addf %172, %173 : vector<8x32xf32>
    %175 = math.tanh %174 : vector<8x32xf32>
    %176 = arith.mulf %171, %175 : vector<8x32xf32>
    %cst_60 = arith.constant 3.000000e+00 : f32
    %177 = vector.broadcast %cst_60 : f32 to vector<8x1xf32>
    %178 = arith.cmpf ogt, %6, %177 : vector<8x1xf32>
    %179 = vector.shape_cast %178 : vector<8x1xi1> to vector<8x1xi1>
    %180 = vector.broadcast %179 : vector<8x1xi1> to vector<8x32xi1>
    %181 = arith.select %180, %176, %137 : vector<8x32xi1>, vector<8x32xf32>
    %182 = vector.shape_cast %178 : vector<8x1xi1> to vector<8x1xi1>
    %183 = vector.broadcast %182 : vector<8x1xi1> to vector<8x32xi1>
    %184 = arith.select %183, %174, %140 : vector<8x32xi1>, vector<8x32xf32>
    %185 = vector.extract_strided_slice %5 {offsets = [32, 0], sizes = [8, 128], strides = [1, 1]} : vector<48x128xf32> to vector<8x128xf32>
    %186 = vector.extract_strided_slice %181 {offsets = [0, 0], sizes = [8, 8], strides = [1, 1]} : vector<8x32xf32> to vector<8x8xf32>
    %c0_61 = arith.constant 0 : index
    %c0_62 = arith.constant 0 : index
    %187 = vector.load %arg4[%c0_61, %c0_62] : memref<8x128xf32, #tpu.memory_space<vmem>>, vector<8x128xf32>
    %cst_63 = arith.constant dense<0.000000e+00> : vector<8x128xf32>
    %188 = tpu.matmul %186, %187, %cst_63 {dimension_numbers = #tpu.dot_dimension_numbers<[1], [0], [0], [1], [0, 0, 1, 1], [], []>} : vector<8x8xf32>, vector<8x128xf32>, vector<8x128xf32> -> vector<8x128xf32>
    %189 = arith.addf %185, %188 : vector<8x128xf32>
    %190 = vector.extract_strided_slice %189 {offsets = [0, 0], sizes = [8, 32], strides = [1, 1]} : vector<8x128xf32> to vector<8x32xf32>
    %cst_64 = arith.constant 5.000000e-01 : f32
    %191 = vector.broadcast %cst_64 : f32 to vector<8x32xf32>
    %192 = arith.mulf %191, %190 : vector<8x32xf32>
    %193 = math.tanh %192 : vector<8x32xf32>
    %cst_65 = arith.constant 5.000000e-01 : f32
    %194 = vector.broadcast %cst_65 : f32 to vector<8x32xf32>
    %195 = arith.mulf %194, %193 : vector<8x32xf32>
    %cst_66 = arith.constant 5.000000e-01 : f32
    %196 = vector.broadcast %cst_66 : f32 to vector<8x32xf32>
    %197 = arith.addf %195, %196 : vector<8x32xf32>
    %198 = vector.extract_strided_slice %189 {offsets = [0, 32], sizes = [8, 32], strides = [1, 1]} : vector<8x128xf32> to vector<8x32xf32>
    %cst_67 = arith.constant 5.000000e-01 : f32
    %199 = vector.broadcast %cst_67 : f32 to vector<8x32xf32>
    %200 = arith.mulf %199, %198 : vector<8x32xf32>
    %201 = math.tanh %200 : vector<8x32xf32>
    %cst_68 = arith.constant 5.000000e-01 : f32
    %202 = vector.broadcast %cst_68 : f32 to vector<8x32xf32>
    %203 = arith.mulf %202, %201 : vector<8x32xf32>
    %cst_69 = arith.constant 5.000000e-01 : f32
    %204 = vector.broadcast %cst_69 : f32 to vector<8x32xf32>
    %205 = arith.addf %203, %204 : vector<8x32xf32>
    %206 = vector.extract_strided_slice %189 {offsets = [0, 64], sizes = [8, 32], strides = [1, 1]} : vector<8x128xf32> to vector<8x32xf32>
    %207 = math.tanh %206 : vector<8x32xf32>
    %208 = vector.extract_strided_slice %189 {offsets = [0, 96], sizes = [8, 32], strides = [1, 1]} : vector<8x128xf32> to vector<8x32xf32>
    %cst_70 = arith.constant 5.000000e-01 : f32
    %209 = vector.broadcast %cst_70 : f32 to vector<8x32xf32>
    %210 = arith.mulf %209, %208 : vector<8x32xf32>
    %211 = math.tanh %210 : vector<8x32xf32>
    %cst_71 = arith.constant 5.000000e-01 : f32
    %212 = vector.broadcast %cst_71 : f32 to vector<8x32xf32>
    %213 = arith.mulf %212, %211 : vector<8x32xf32>
    %cst_72 = arith.constant 5.000000e-01 : f32
    %214 = vector.broadcast %cst_72 : f32 to vector<8x32xf32>
    %215 = arith.addf %213, %214 : vector<8x32xf32>
    %216 = arith.mulf %205, %184 : vector<8x32xf32>
    %217 = arith.mulf %197, %207 : vector<8x32xf32>
    %218 = arith.addf %216, %217 : vector<8x32xf32>
    %219 = math.tanh %218 : vector<8x32xf32>
    %220 = arith.mulf %215, %219 : vector<8x32xf32>
    %cst_73 = arith.constant 4.000000e+00 : f32
    %221 = vector.broadcast %cst_73 : f32 to vector<8x1xf32>
    %222 = arith.cmpf ogt, %6, %221 : vector<8x1xf32>
    %223 = vector.shape_cast %222 : vector<8x1xi1> to vector<8x1xi1>
    %224 = vector.broadcast %223 : vector<8x1xi1> to vector<8x32xi1>
    %225 = arith.select %224, %220, %181 : vector<8x32xi1>, vector<8x32xf32>
    %226 = vector.shape_cast %222 : vector<8x1xi1> to vector<8x1xi1>
    %227 = vector.broadcast %226 : vector<8x1xi1> to vector<8x32xi1>
    %228 = arith.select %227, %218, %184 : vector<8x32xi1>, vector<8x32xf32>
    %229 = vector.extract_strided_slice %5 {offsets = [40, 0], sizes = [8, 128], strides = [1, 1]} : vector<48x128xf32> to vector<8x128xf32>
    %230 = vector.extract_strided_slice %225 {offsets = [0, 0], sizes = [8, 8], strides = [1, 1]} : vector<8x32xf32> to vector<8x8xf32>
    %c0_74 = arith.constant 0 : index
    %c0_75 = arith.constant 0 : index
    %231 = vector.load %arg4[%c0_74, %c0_75] : memref<8x128xf32, #tpu.memory_space<vmem>>, vector<8x128xf32>
    %cst_76 = arith.constant dense<0.000000e+00> : vector<8x128xf32>
    %232 = tpu.matmul %230, %231, %cst_76 {dimension_numbers = #tpu.dot_dimension_numbers<[1], [0], [0], [1], [0, 0, 1, 1], [], []>} : vector<8x8xf32>, vector<8x128xf32>, vector<8x128xf32> -> vector<8x128xf32>
    %233 = arith.addf %229, %232 : vector<8x128xf32>
    %234 = vector.extract_strided_slice %233 {offsets = [0, 0], sizes = [8, 32], strides = [1, 1]} : vector<8x128xf32> to vector<8x32xf32>
    %cst_77 = arith.constant 5.000000e-01 : f32
    %235 = vector.broadcast %cst_77 : f32 to vector<8x32xf32>
    %236 = arith.mulf %235, %234 : vector<8x32xf32>
    %237 = math.tanh %236 : vector<8x32xf32>
    %cst_78 = arith.constant 5.000000e-01 : f32
    %238 = vector.broadcast %cst_78 : f32 to vector<8x32xf32>
    %239 = arith.mulf %238, %237 : vector<8x32xf32>
    %cst_79 = arith.constant 5.000000e-01 : f32
    %240 = vector.broadcast %cst_79 : f32 to vector<8x32xf32>
    %241 = arith.addf %239, %240 : vector<8x32xf32>
    %242 = vector.extract_strided_slice %233 {offsets = [0, 32], sizes = [8, 32], strides = [1, 1]} : vector<8x128xf32> to vector<8x32xf32>
    %cst_80 = arith.constant 5.000000e-01 : f32
    %243 = vector.broadcast %cst_80 : f32 to vector<8x32xf32>
    %244 = arith.mulf %243, %242 : vector<8x32xf32>
    %245 = math.tanh %244 : vector<8x32xf32>
    %cst_81 = arith.constant 5.000000e-01 : f32
    %246 = vector.broadcast %cst_81 : f32 to vector<8x32xf32>
    %247 = arith.mulf %246, %245 : vector<8x32xf32>
    %cst_82 = arith.constant 5.000000e-01 : f32
    %248 = vector.broadcast %cst_82 : f32 to vector<8x32xf32>
    %249 = arith.addf %247, %248 : vector<8x32xf32>
    %250 = vector.extract_strided_slice %233 {offsets = [0, 64], sizes = [8, 32], strides = [1, 1]} : vector<8x128xf32> to vector<8x32xf32>
    %251 = math.tanh %250 : vector<8x32xf32>
    %252 = vector.extract_strided_slice %233 {offsets = [0, 96], sizes = [8, 32], strides = [1, 1]} : vector<8x128xf32> to vector<8x32xf32>
    %cst_83 = arith.constant 5.000000e-01 : f32
    %253 = vector.broadcast %cst_83 : f32 to vector<8x32xf32>
    %254 = arith.mulf %253, %252 : vector<8x32xf32>
    %255 = math.tanh %254 : vector<8x32xf32>
    %cst_84 = arith.constant 5.000000e-01 : f32
    %256 = vector.broadcast %cst_84 : f32 to vector<8x32xf32>
    %257 = arith.mulf %256, %255 : vector<8x32xf32>
    %cst_85 = arith.constant 5.000000e-01 : f32
    %258 = vector.broadcast %cst_85 : f32 to vector<8x32xf32>
    %259 = arith.addf %257, %258 : vector<8x32xf32>
    %260 = arith.mulf %249, %228 : vector<8x32xf32>
    %261 = arith.mulf %241, %251 : vector<8x32xf32>
    %262 = arith.addf %260, %261 : vector<8x32xf32>
    %263 = math.tanh %262 : vector<8x32xf32>
    %264 = arith.mulf %259, %263 : vector<8x32xf32>
    %cst_86 = arith.constant 5.000000e+00 : f32
    %265 = vector.broadcast %cst_86 : f32 to vector<8x1xf32>
    %266 = arith.cmpf ogt, %6, %265 : vector<8x1xf32>
    %267 = vector.shape_cast %266 : vector<8x1xi1> to vector<8x1xi1>
    %268 = vector.broadcast %267 : vector<8x1xi1> to vector<8x32xi1>
    %269 = arith.select %268, %264, %225 : vector<8x32xi1>, vector<8x32xf32>
    %c0_87 = arith.constant 0 : index
    %c0_88 = arith.constant 0 : index
    %270 = vector.load %arg6[%c0_87, %c0_88] : memref<8x16xf32, #tpu.memory_space<vmem>>, vector<8x16xf32>
    %c0_89 = arith.constant 0 : index
    %c0_90 = arith.constant 0 : index
    %271 = vector.load %arg7[%c0_89, %c0_90] : memref<16x128xf32, #tpu.memory_space<vmem>>, vector<16x128xf32>
    %cst_91 = arith.constant dense<0.000000e+00> : vector<8x128xf32>
    %272 = tpu.matmul %270, %271, %cst_91 {dimension_numbers = #tpu.dot_dimension_numbers<[1], [0], [0], [1], [0, 0, 1, 1], [], []>} : vector<8x16xf32>, vector<16x128xf32>, vector<8x128xf32> -> vector<8x128xf32>
    %273 = vector.extract_strided_slice %269 {offsets = [0, 0], sizes = [8, 8], strides = [1, 1]} : vector<8x32xf32> to vector<8x8xf32>
    %c0_92 = arith.constant 0 : index
    %c0_93 = arith.constant 0 : index
    %274 = vector.load %arg8[%c0_92, %c0_93] : memref<8x128xf32, #tpu.memory_space<vmem>>, vector<8x128xf32>
    %cst_94 = arith.constant dense<0.000000e+00> : vector<8x128xf32>
    %275 = tpu.matmul %273, %274, %cst_94 {dimension_numbers = #tpu.dot_dimension_numbers<[1], [0], [0], [1], [0, 0, 1, 1], [], []>} : vector<8x8xf32>, vector<8x128xf32>, vector<8x128xf32> -> vector<8x128xf32>
    %276 = arith.addf %272, %275 : vector<8x128xf32>
    %c0_95 = arith.constant 0 : index
    %c0_96 = arith.constant 0 : index
    %277 = vector.load %arg10[%c0_95, %c0_96] : memref<1x128xf32, #tpu.memory_space<vmem>>, vector<1x128xf32>
    %278 = vector.broadcast %277 : vector<1x128xf32> to vector<8x128xf32>
    %279 = arith.addf %276, %278 : vector<8x128xf32>
    %cst_97 = arith.constant 0.000000e+00 : f32
    %280 = vector.broadcast %cst_97 : f32 to vector<1x32xf32>
    %cst_98 = arith.constant 0.000000e+00 : f32
    %281 = vector.broadcast %cst_98 : f32 to vector<1x32xf32>
    %282 = vector.extract_strided_slice %279 {offsets = [0, 0], sizes = [1, 128], strides = [1, 1]} : vector<8x128xf32> to vector<1x128xf32>
    %283 = vector.extract_strided_slice %280 {offsets = [0, 0], sizes = [1, 16], strides = [1, 1]} : vector<1x32xf32> to vector<1x16xf32>
    %c0_99 = arith.constant 0 : index
    %c0_100 = arith.constant 0 : index
    %284 = vector.load %arg9[%c0_99, %c0_100] : memref<16x128xf32, #tpu.memory_space<vmem>>, vector<16x128xf32>
    %cst_101 = arith.constant dense<0.000000e+00> : vector<1x128xf32>
    %285 = tpu.matmul %283, %284, %cst_101 {dimension_numbers = #tpu.dot_dimension_numbers<[1], [0], [0], [1], [0, 0, 1, 1], [], []>} : vector<1x16xf32>, vector<16x128xf32>, vector<1x128xf32> -> vector<1x128xf32>
    %286 = arith.addf %282, %285 : vector<1x128xf32>
    %287 = vector.extract_strided_slice %286 {offsets = [0, 0], sizes = [1, 32], strides = [1, 1]} : vector<1x128xf32> to vector<1x32xf32>
    %cst_102 = arith.constant 5.000000e-01 : f32
    %288 = vector.broadcast %cst_102 : f32 to vector<1x32xf32>
    %289 = arith.mulf %288, %287 : vector<1x32xf32>
    %290 = math.tanh %289 : vector<1x32xf32>
    %cst_103 = arith.constant 5.000000e-01 : f32
    %291 = vector.broadcast %cst_103 : f32 to vector<1x32xf32>
    %292 = arith.mulf %291, %290 : vector<1x32xf32>
    %cst_104 = arith.constant 5.000000e-01 : f32
    %293 = vector.broadcast %cst_104 : f32 to vector<1x32xf32>
    %294 = arith.addf %292, %293 : vector<1x32xf32>
    %295 = vector.extract_strided_slice %286 {offsets = [0, 32], sizes = [1, 32], strides = [1, 1]} : vector<1x128xf32> to vector<1x32xf32>
    %cst_105 = arith.constant 5.000000e-01 : f32
    %296 = vector.broadcast %cst_105 : f32 to vector<1x32xf32>
    %297 = arith.mulf %296, %295 : vector<1x32xf32>
    %298 = math.tanh %297 : vector<1x32xf32>
    %cst_106 = arith.constant 5.000000e-01 : f32
    %299 = vector.broadcast %cst_106 : f32 to vector<1x32xf32>
    %300 = arith.mulf %299, %298 : vector<1x32xf32>
    %cst_107 = arith.constant 5.000000e-01 : f32
    %301 = vector.broadcast %cst_107 : f32 to vector<1x32xf32>
    %302 = arith.addf %300, %301 : vector<1x32xf32>
    %303 = vector.extract_strided_slice %286 {offsets = [0, 64], sizes = [1, 32], strides = [1, 1]} : vector<1x128xf32> to vector<1x32xf32>
    %304 = math.tanh %303 : vector<1x32xf32>
    %305 = vector.extract_strided_slice %286 {offsets = [0, 96], sizes = [1, 32], strides = [1, 1]} : vector<1x128xf32> to vector<1x32xf32>
    %cst_108 = arith.constant 5.000000e-01 : f32
    %306 = vector.broadcast %cst_108 : f32 to vector<1x32xf32>
    %307 = arith.mulf %306, %305 : vector<1x32xf32>
    %308 = math.tanh %307 : vector<1x32xf32>
    %cst_109 = arith.constant 5.000000e-01 : f32
    %309 = vector.broadcast %cst_109 : f32 to vector<1x32xf32>
    %310 = arith.mulf %309, %308 : vector<1x32xf32>
    %cst_110 = arith.constant 5.000000e-01 : f32
    %311 = vector.broadcast %cst_110 : f32 to vector<1x32xf32>
    %312 = arith.addf %310, %311 : vector<1x32xf32>
    %313 = arith.mulf %302, %281 : vector<1x32xf32>
    %314 = arith.mulf %294, %304 : vector<1x32xf32>
    %315 = arith.addf %313, %314 : vector<1x32xf32>
    %316 = math.tanh %315 : vector<1x32xf32>
    %317 = arith.mulf %312, %316 : vector<1x32xf32>
    %318 = vector.extract_strided_slice %279 {offsets = [1, 0], sizes = [1, 128], strides = [1, 1]} : vector<8x128xf32> to vector<1x128xf32>
    %319 = vector.extract_strided_slice %317 {offsets = [0, 0], sizes = [1, 16], strides = [1, 1]} : vector<1x32xf32> to vector<1x16xf32>
    %c0_111 = arith.constant 0 : index
    %c0_112 = arith.constant 0 : index
    %320 = vector.load %arg9[%c0_111, %c0_112] : memref<16x128xf32, #tpu.memory_space<vmem>>, vector<16x128xf32>
    %cst_113 = arith.constant dense<0.000000e+00> : vector<1x128xf32>
    %321 = tpu.matmul %319, %320, %cst_113 {dimension_numbers = #tpu.dot_dimension_numbers<[1], [0], [0], [1], [0, 0, 1, 1], [], []>} : vector<1x16xf32>, vector<16x128xf32>, vector<1x128xf32> -> vector<1x128xf32>
    %322 = arith.addf %318, %321 : vector<1x128xf32>
    %323 = vector.extract_strided_slice %322 {offsets = [0, 0], sizes = [1, 32], strides = [1, 1]} : vector<1x128xf32> to vector<1x32xf32>
    %cst_114 = arith.constant 5.000000e-01 : f32
    %324 = vector.broadcast %cst_114 : f32 to vector<1x32xf32>
    %325 = arith.mulf %324, %323 : vector<1x32xf32>
    %326 = math.tanh %325 : vector<1x32xf32>
    %cst_115 = arith.constant 5.000000e-01 : f32
    %327 = vector.broadcast %cst_115 : f32 to vector<1x32xf32>
    %328 = arith.mulf %327, %326 : vector<1x32xf32>
    %cst_116 = arith.constant 5.000000e-01 : f32
    %329 = vector.broadcast %cst_116 : f32 to vector<1x32xf32>
    %330 = arith.addf %328, %329 : vector<1x32xf32>
    %331 = vector.extract_strided_slice %322 {offsets = [0, 32], sizes = [1, 32], strides = [1, 1]} : vector<1x128xf32> to vector<1x32xf32>
    %cst_117 = arith.constant 5.000000e-01 : f32
    %332 = vector.broadcast %cst_117 : f32 to vector<1x32xf32>
    %333 = arith.mulf %332, %331 : vector<1x32xf32>
    %334 = math.tanh %333 : vector<1x32xf32>
    %cst_118 = arith.constant 5.000000e-01 : f32
    %335 = vector.broadcast %cst_118 : f32 to vector<1x32xf32>
    %336 = arith.mulf %335, %334 : vector<1x32xf32>
    %cst_119 = arith.constant 5.000000e-01 : f32
    %337 = vector.broadcast %cst_119 : f32 to vector<1x32xf32>
    %338 = arith.addf %336, %337 : vector<1x32xf32>
    %339 = vector.extract_strided_slice %322 {offsets = [0, 64], sizes = [1, 32], strides = [1, 1]} : vector<1x128xf32> to vector<1x32xf32>
    %340 = math.tanh %339 : vector<1x32xf32>
    %341 = vector.extract_strided_slice %322 {offsets = [0, 96], sizes = [1, 32], strides = [1, 1]} : vector<1x128xf32> to vector<1x32xf32>
    %cst_120 = arith.constant 5.000000e-01 : f32
    %342 = vector.broadcast %cst_120 : f32 to vector<1x32xf32>
    %343 = arith.mulf %342, %341 : vector<1x32xf32>
    %344 = math.tanh %343 : vector<1x32xf32>
    %cst_121 = arith.constant 5.000000e-01 : f32
    %345 = vector.broadcast %cst_121 : f32 to vector<1x32xf32>
    %346 = arith.mulf %345, %344 : vector<1x32xf32>
    %cst_122 = arith.constant 5.000000e-01 : f32
    %347 = vector.broadcast %cst_122 : f32 to vector<1x32xf32>
    %348 = arith.addf %346, %347 : vector<1x32xf32>
    %349 = arith.mulf %338, %315 : vector<1x32xf32>
    %350 = arith.mulf %330, %340 : vector<1x32xf32>
    %351 = arith.addf %349, %350 : vector<1x32xf32>
    %352 = math.tanh %351 : vector<1x32xf32>
    %353 = arith.mulf %348, %352 : vector<1x32xf32>
    %354 = vector.extract_strided_slice %279 {offsets = [2, 0], sizes = [1, 128], strides = [1, 1]} : vector<8x128xf32> to vector<1x128xf32>
    %355 = vector.extract_strided_slice %353 {offsets = [0, 0], sizes = [1, 16], strides = [1, 1]} : vector<1x32xf32> to vector<1x16xf32>
    %c0_123 = arith.constant 0 : index
    %c0_124 = arith.constant 0 : index
    %356 = vector.load %arg9[%c0_123, %c0_124] : memref<16x128xf32, #tpu.memory_space<vmem>>, vector<16x128xf32>
    %cst_125 = arith.constant dense<0.000000e+00> : vector<1x128xf32>
    %357 = tpu.matmul %355, %356, %cst_125 {dimension_numbers = #tpu.dot_dimension_numbers<[1], [0], [0], [1], [0, 0, 1, 1], [], []>} : vector<1x16xf32>, vector<16x128xf32>, vector<1x128xf32> -> vector<1x128xf32>
    %358 = arith.addf %354, %357 : vector<1x128xf32>
    %359 = vector.extract_strided_slice %358 {offsets = [0, 0], sizes = [1, 32], strides = [1, 1]} : vector<1x128xf32> to vector<1x32xf32>
    %cst_126 = arith.constant 5.000000e-01 : f32
    %360 = vector.broadcast %cst_126 : f32 to vector<1x32xf32>
    %361 = arith.mulf %360, %359 : vector<1x32xf32>
    %362 = math.tanh %361 : vector<1x32xf32>
    %cst_127 = arith.constant 5.000000e-01 : f32
    %363 = vector.broadcast %cst_127 : f32 to vector<1x32xf32>
    %364 = arith.mulf %363, %362 : vector<1x32xf32>
    %cst_128 = arith.constant 5.000000e-01 : f32
    %365 = vector.broadcast %cst_128 : f32 to vector<1x32xf32>
    %366 = arith.addf %364, %365 : vector<1x32xf32>
    %367 = vector.extract_strided_slice %358 {offsets = [0, 32], sizes = [1, 32], strides = [1, 1]} : vector<1x128xf32> to vector<1x32xf32>
    %cst_129 = arith.constant 5.000000e-01 : f32
    %368 = vector.broadcast %cst_129 : f32 to vector<1x32xf32>
    %369 = arith.mulf %368, %367 : vector<1x32xf32>
    %370 = math.tanh %369 : vector<1x32xf32>
    %cst_130 = arith.constant 5.000000e-01 : f32
    %371 = vector.broadcast %cst_130 : f32 to vector<1x32xf32>
    %372 = arith.mulf %371, %370 : vector<1x32xf32>
    %cst_131 = arith.constant 5.000000e-01 : f32
    %373 = vector.broadcast %cst_131 : f32 to vector<1x32xf32>
    %374 = arith.addf %372, %373 : vector<1x32xf32>
    %375 = vector.extract_strided_slice %358 {offsets = [0, 64], sizes = [1, 32], strides = [1, 1]} : vector<1x128xf32> to vector<1x32xf32>
    %376 = math.tanh %375 : vector<1x32xf32>
    %377 = vector.extract_strided_slice %358 {offsets = [0, 96], sizes = [1, 32], strides = [1, 1]} : vector<1x128xf32> to vector<1x32xf32>
    %cst_132 = arith.constant 5.000000e-01 : f32
    %378 = vector.broadcast %cst_132 : f32 to vector<1x32xf32>
    %379 = arith.mulf %378, %377 : vector<1x32xf32>
    %380 = math.tanh %379 : vector<1x32xf32>
    %cst_133 = arith.constant 5.000000e-01 : f32
    %381 = vector.broadcast %cst_133 : f32 to vector<1x32xf32>
    %382 = arith.mulf %381, %380 : vector<1x32xf32>
    %cst_134 = arith.constant 5.000000e-01 : f32
    %383 = vector.broadcast %cst_134 : f32 to vector<1x32xf32>
    %384 = arith.addf %382, %383 : vector<1x32xf32>
    %385 = arith.mulf %374, %351 : vector<1x32xf32>
    %386 = arith.mulf %366, %376 : vector<1x32xf32>
    %387 = arith.addf %385, %386 : vector<1x32xf32>
    %388 = math.tanh %387 : vector<1x32xf32>
    %389 = arith.mulf %384, %388 : vector<1x32xf32>
    %390 = vector.extract_strided_slice %279 {offsets = [3, 0], sizes = [1, 128], strides = [1, 1]} : vector<8x128xf32> to vector<1x128xf32>
    %391 = vector.extract_strided_slice %389 {offsets = [0, 0], sizes = [1, 16], strides = [1, 1]} : vector<1x32xf32> to vector<1x16xf32>
    %c0_135 = arith.constant 0 : index
    %c0_136 = arith.constant 0 : index
    %392 = vector.load %arg9[%c0_135, %c0_136] : memref<16x128xf32, #tpu.memory_space<vmem>>, vector<16x128xf32>
    %cst_137 = arith.constant dense<0.000000e+00> : vector<1x128xf32>
    %393 = tpu.matmul %391, %392, %cst_137 {dimension_numbers = #tpu.dot_dimension_numbers<[1], [0], [0], [1], [0, 0, 1, 1], [], []>} : vector<1x16xf32>, vector<16x128xf32>, vector<1x128xf32> -> vector<1x128xf32>
    %394 = arith.addf %390, %393 : vector<1x128xf32>
    %395 = vector.extract_strided_slice %394 {offsets = [0, 0], sizes = [1, 32], strides = [1, 1]} : vector<1x128xf32> to vector<1x32xf32>
    %cst_138 = arith.constant 5.000000e-01 : f32
    %396 = vector.broadcast %cst_138 : f32 to vector<1x32xf32>
    %397 = arith.mulf %396, %395 : vector<1x32xf32>
    %398 = math.tanh %397 : vector<1x32xf32>
    %cst_139 = arith.constant 5.000000e-01 : f32
    %399 = vector.broadcast %cst_139 : f32 to vector<1x32xf32>
    %400 = arith.mulf %399, %398 : vector<1x32xf32>
    %cst_140 = arith.constant 5.000000e-01 : f32
    %401 = vector.broadcast %cst_140 : f32 to vector<1x32xf32>
    %402 = arith.addf %400, %401 : vector<1x32xf32>
    %403 = vector.extract_strided_slice %394 {offsets = [0, 32], sizes = [1, 32], strides = [1, 1]} : vector<1x128xf32> to vector<1x32xf32>
    %cst_141 = arith.constant 5.000000e-01 : f32
    %404 = vector.broadcast %cst_141 : f32 to vector<1x32xf32>
    %405 = arith.mulf %404, %403 : vector<1x32xf32>
    %406 = math.tanh %405 : vector<1x32xf32>
    %cst_142 = arith.constant 5.000000e-01 : f32
    %407 = vector.broadcast %cst_142 : f32 to vector<1x32xf32>
    %408 = arith.mulf %407, %406 : vector<1x32xf32>
    %cst_143 = arith.constant 5.000000e-01 : f32
    %409 = vector.broadcast %cst_143 : f32 to vector<1x32xf32>
    %410 = arith.addf %408, %409 : vector<1x32xf32>
    %411 = vector.extract_strided_slice %394 {offsets = [0, 64], sizes = [1, 32], strides = [1, 1]} : vector<1x128xf32> to vector<1x32xf32>
    %412 = math.tanh %411 : vector<1x32xf32>
    %413 = vector.extract_strided_slice %394 {offsets = [0, 96], sizes = [1, 32], strides = [1, 1]} : vector<1x128xf32> to vector<1x32xf32>
    %cst_144 = arith.constant 5.000000e-01 : f32
    %414 = vector.broadcast %cst_144 : f32 to vector<1x32xf32>
    %415 = arith.mulf %414, %413 : vector<1x32xf32>
    %416 = math.tanh %415 : vector<1x32xf32>
    %cst_145 = arith.constant 5.000000e-01 : f32
    %417 = vector.broadcast %cst_145 : f32 to vector<1x32xf32>
    %418 = arith.mulf %417, %416 : vector<1x32xf32>
    %cst_146 = arith.constant 5.000000e-01 : f32
    %419 = vector.broadcast %cst_146 : f32 to vector<1x32xf32>
    %420 = arith.addf %418, %419 : vector<1x32xf32>
    %421 = arith.mulf %410, %387 : vector<1x32xf32>
    %422 = arith.mulf %402, %412 : vector<1x32xf32>
    %423 = arith.addf %421, %422 : vector<1x32xf32>
    %424 = math.tanh %423 : vector<1x32xf32>
    %425 = arith.mulf %420, %424 : vector<1x32xf32>
    %426 = vector.extract_strided_slice %279 {offsets = [4, 0], sizes = [1, 128], strides = [1, 1]} : vector<8x128xf32> to vector<1x128xf32>
    %427 = vector.extract_strided_slice %425 {offsets = [0, 0], sizes = [1, 16], strides = [1, 1]} : vector<1x32xf32> to vector<1x16xf32>
    %c0_147 = arith.constant 0 : index
    %c0_148 = arith.constant 0 : index
    %428 = vector.load %arg9[%c0_147, %c0_148] : memref<16x128xf32, #tpu.memory_space<vmem>>, vector<16x128xf32>
    %cst_149 = arith.constant dense<0.000000e+00> : vector<1x128xf32>
    %429 = tpu.matmul %427, %428, %cst_149 {dimension_numbers = #tpu.dot_dimension_numbers<[1], [0], [0], [1], [0, 0, 1, 1], [], []>} : vector<1x16xf32>, vector<16x128xf32>, vector<1x128xf32> -> vector<1x128xf32>
    %430 = arith.addf %426, %429 : vector<1x128xf32>
    %431 = vector.extract_strided_slice %430 {offsets = [0, 0], sizes = [1, 32], strides = [1, 1]} : vector<1x128xf32> to vector<1x32xf32>
    %cst_150 = arith.constant 5.000000e-01 : f32
    %432 = vector.broadcast %cst_150 : f32 to vector<1x32xf32>
    %433 = arith.mulf %432, %431 : vector<1x32xf32>
    %434 = math.tanh %433 : vector<1x32xf32>
    %cst_151 = arith.constant 5.000000e-01 : f32
    %435 = vector.broadcast %cst_151 : f32 to vector<1x32xf32>
    %436 = arith.mulf %435, %434 : vector<1x32xf32>
    %cst_152 = arith.constant 5.000000e-01 : f32
    %437 = vector.broadcast %cst_152 : f32 to vector<1x32xf32>
    %438 = arith.addf %436, %437 : vector<1x32xf32>
    %439 = vector.extract_strided_slice %430 {offsets = [0, 32], sizes = [1, 32], strides = [1, 1]} : vector<1x128xf32> to vector<1x32xf32>
    %cst_153 = arith.constant 5.000000e-01 : f32
    %440 = vector.broadcast %cst_153 : f32 to vector<1x32xf32>
    %441 = arith.mulf %440, %439 : vector<1x32xf32>
    %442 = math.tanh %441 : vector<1x32xf32>
    %cst_154 = arith.constant 5.000000e-01 : f32
    %443 = vector.broadcast %cst_154 : f32 to vector<1x32xf32>
    %444 = arith.mulf %443, %442 : vector<1x32xf32>
    %cst_155 = arith.constant 5.000000e-01 : f32
    %445 = vector.broadcast %cst_155 : f32 to vector<1x32xf32>
    %446 = arith.addf %444, %445 : vector<1x32xf32>
    %447 = vector.extract_strided_slice %430 {offsets = [0, 64], sizes = [1, 32], strides = [1, 1]} : vector<1x128xf32> to vector<1x32xf32>
    %448 = math.tanh %447 : vector<1x32xf32>
    %449 = vector.extract_strided_slice %430 {offsets = [0, 96], sizes = [1, 32], strides = [1, 1]} : vector<1x128xf32> to vector<1x32xf32>
    %cst_156 = arith.constant 5.000000e-01 : f32
    %450 = vector.broadcast %cst_156 : f32 to vector<1x32xf32>
    %451 = arith.mulf %450, %449 : vector<1x32xf32>
    %452 = math.tanh %451 : vector<1x32xf32>
    %cst_157 = arith.constant 5.000000e-01 : f32
    %453 = vector.broadcast %cst_157 : f32 to vector<1x32xf32>
    %454 = arith.mulf %453, %452 : vector<1x32xf32>
    %cst_158 = arith.constant 5.000000e-01 : f32
    %455 = vector.broadcast %cst_158 : f32 to vector<1x32xf32>
    %456 = arith.addf %454, %455 : vector<1x32xf32>
    %457 = arith.mulf %446, %423 : vector<1x32xf32>
    %458 = arith.mulf %438, %448 : vector<1x32xf32>
    %459 = arith.addf %457, %458 : vector<1x32xf32>
    %460 = math.tanh %459 : vector<1x32xf32>
    %461 = arith.mulf %456, %460 : vector<1x32xf32>
    %cst_159 = arith.constant 0.000000e+00 : f32
    %462 = vector.broadcast %cst_159 : f32 to vector<3x32xf32>
    %463 = tpu.concatenate %317, %353, %389, %425, %461, %462 in 0 : vector<1x32xf32>, vector<1x32xf32>, vector<1x32xf32>, vector<1x32xf32>, vector<1x32xf32>, vector<3x32xf32> -> vector<8x32xf32>
    %464 = vector.extract_strided_slice %463 {offsets = [0, 0], sizes = [8, 16], strides = [1, 1]} : vector<8x32xf32> to vector<8x16xf32>
    %c0_160 = arith.constant 0 : index
    %c0_161 = arith.constant 0 : index
    %465 = vector.load %arg11[%c0_160, %c0_161] : memref<16x128xf32, #tpu.memory_space<vmem>>, vector<16x128xf32>
    %cst_162 = arith.constant dense<0.000000e+00> : vector<8x128xf32>
    %466 = tpu.matmul %464, %465, %cst_162 {dimension_numbers = #tpu.dot_dimension_numbers<[1], [0], [0], [1], [0, 0, 1, 1], [], []>} : vector<8x16xf32>, vector<16x128xf32>, vector<8x128xf32> -> vector<8x128xf32>
    %c0_163 = arith.constant 0 : index
    %c0_164 = arith.constant 0 : index
    %467 = vector.load %arg12[%c0_163, %c0_164] : memref<1x128xf32, #tpu.memory_space<vmem>>, vector<1x128xf32>
    %468 = vector.broadcast %467 : vector<1x128xf32> to vector<8x128xf32>
    %469 = arith.addf %466, %468 : vector<8x128xf32>
    %c0_165 = arith.constant 0 : index
    %c0_166 = arith.constant 0 : index
    %470 = vector.load %arg13[%c0_165, %c0_166] : memref<8x128xf32, #tpu.memory_space<vmem>>, vector<8x128xf32>
    tpu.vector_store %arg13[%c0_165, %c0_166], %469 {strides = array<i32>} : memref<8x128xf32, #tpu.memory_space<vmem>>, vector<8x128xf32>,
    return
  }
  func.func @transform_0(%arg0: i32) -> (i32, i32) {
    %c0_i32 = arith.constant 0 : i32
    %c0_i32_0 = arith.constant 0 : i32
    %c0_i32_1 = arith.constant 0 : i32
    return %c0_i32, %c0_i32_0 : i32, i32
  }
  func.func @transform_1(%arg0: i32) -> (i32, i32) {
    %c0_i32 = arith.constant 0 : i32
    %c0_i32_0 = arith.constant 0 : i32
    %c0_i32_1 = arith.constant 0 : i32
    return %c0_i32, %c0_i32_0 : i32, i32
  }
  func.func @transform_2(%arg0: i32) -> (i32, i32) {
    %c0_i32 = arith.constant 0 : i32
    %c0_i32_0 = arith.constant 0 : i32
    %c0_i32_1 = arith.constant 0 : i32
    return %c0_i32, %c0_i32_0 : i32, i32
  }
  func.func @transform_3(%arg0: i32) -> (i32, i32) {
    %c0_i32 = arith.constant 0 : i32
    %c0_i32_0 = arith.constant 0 : i32
    %c0_i32_1 = arith.constant 0 : i32
    return %c0_i32, %c0_i32_0 : i32, i32
  }
  func.func @transform_4(%arg0: i32) -> (i32, i32) {
    %c0_i32 = arith.constant 0 : i32
    %c0_i32_0 = arith.constant 0 : i32
    %c0_i32_1 = arith.constant 0 : i32
    return %c0_i32, %c0_i32_0 : i32, i32
  }
  func.func @transform_5(%arg0: i32) -> (i32, i32) {
    %c0_i32 = arith.constant 0 : i32
    %c0_i32_0 = arith.constant 0 : i32
    %c0_i32_1 = arith.constant 0 : i32
    return %c0_i32, %c0_i32_0 : i32, i32
  }
  func.func @transform_6(%arg0: i32) -> (i32, i32) {
    %c0_i32 = arith.constant 0 : i32
    %c0_i32_0 = arith.constant 0 : i32
    %c0_i32_1 = arith.constant 0 : i32
    return %c0_i32, %c0_i32_0 : i32, i32
  }
  func.func @transform_7(%arg0: i32) -> (i32, i32) {
    %c0_i32 = arith.constant 0 : i32
    %c0_i32_0 = arith.constant 0 : i32
    %c0_i32_1 = arith.constant 0 : i32
    return %c0_i32, %c0_i32_0 : i32, i32
  }
  func.func @transform_8(%arg0: i32) -> (i32, i32) {
    %c0_i32 = arith.constant 0 : i32
    %c0_i32_0 = arith.constant 0 : i32
    %c0_i32_1 = arith.constant 0 : i32
    return %c0_i32, %c0_i32_0 : i32, i32
  }
  func.func @transform_9(%arg0: i32) -> (i32, i32) {
    %c0_i32 = arith.constant 0 : i32
    %c0_i32_0 = arith.constant 0 : i32
    %c0_i32_1 = arith.constant 0 : i32
    return %c0_i32, %c0_i32_0 : i32, i32
  }
  func.func @transform_10(%arg0: i32) -> (i32, i32) {
    %c0_i32 = arith.constant 0 : i32
    %c0_i32_0 = arith.constant 0 : i32
    %c0_i32_1 = arith.constant 0 : i32
    return %c0_i32, %c0_i32_0 : i32, i32
  }
  func.func @transform_11(%arg0: i32) -> (i32, i32) {
    %c0_i32 = arith.constant 0 : i32
    %c0_i32_0 = arith.constant 0 : i32
    %c0_i32_1 = arith.constant 0 : i32
    return %c0_i32, %c0_i32_0 : i32, i32
  }
  func.func @transform_12(%arg0: i32) -> (i32, i32) {
    %c0_i32 = arith.constant 0 : i32
    %c0_i32_0 = arith.constant 0 : i32
    %c0_i32_1 = arith.constant 0 : i32
    return %c0_i32, %c0_i32_0 : i32, i32
  }
}

</mosaic_0001>

<bundles_post_ra>
// kernel: tpu_custom_call.1
= control target key start
LH: loop header
LB: loop body
LE: loop exit
PB: predicated region body
PF: predicated region fallthrough
CT: control target
= control target key end

     0   :  { %17 = vsyncpa [#allocation3], 0  ;;  %s2269_s0 = inlined_call_operand.vmem [shape: f32[48,8], index: 0, kind: input, shape index: {}]   ;;  %s2270_s1 = inlined_call_operand.vmem [shape: f32[8,1], index: 1, kind: input, shape index: {}]   ;;  %s2271_s2 = inlined_call_operand.vmem [shape: f32[8,128], index: 2, kind: input, shape index: {}]   ;;  %s2272_s3 = inlined_call_operand.hbm [shape: f32[8,128], index: 3, kind: input, shape index: {}]   ;;  %s2273_s4 = inlined_call_operand.hbm [shape: f32[1,128], index: 4, kind: input, shape index: {}]   ;;  %s2274_s5 = inlined_call_operand.vmem [shape: f32[8,16], index: 5, kind: input, shape index: {}]   ;;  %s2275_s6 = inlined_call_operand.vmem [shape: f32[16,128], index: 6, kind: input, shape index: {}]   ;;  %s2276_s7 = inlined_call_operand.hbm [shape: f32[8,128], index: 7, kind: input, shape index: {}]   ;;  %s2277_s8 = inlined_call_operand.vmem [shape: f32[16,128], index: 8, kind: input, shape index: {}]   ;;  %s2278_s9 = inlined_call_operand.vmem [shape: f32[1,128], index: 9, kind: input, shape index: {}]   ;;  %s2279_s10 = inlined_call_operand.vmem [shape: f32[16,128], index: 10, kind: input, shape index: {}]   ;;  %s2280_s11 = inlined_call_operand.vmem [shape: f32[1,128], index: 11, kind: input, shape index: {}]   ;;  %s2281_s12 = inlined_call_operand.hbm [shape: f32[8,128], index: 12, kind: output, shape index: {}]  }
   0x1   :  { %18 = vsyncpa [#allocation6], 0 }
   0x2   :  { %19 = vsyncpa [#allocation4], 0  ;;  %s1949_s21 = smov [#allocation5]   ;;  %s1950_s23 = smov [#allocation2]  }
   0x3   :  { %s42_s22 = sshll.u32 %s1949_s21, 4  ;;  %s32_s24 = sshll.u32 %s1950_s23, 4  ;;  %s43_s22 = int_to_ptr.vmem [resolvable:$true] %s42_s22  ;;  %s33_s24 = int_to_ptr.vmem [resolvable:$true] %s32_s24 }
   0x4   :  { %s1871_s25 = scalar_lea.vmem %s43_s22, 16  ;;  %s1875_s26 = scalar_lea.vmem %s43_s22, 32 }
   0x5   :  { %p1872_p0 = scmp.ne.s32.totalorder %s43_s22, %s1871_s25  ;;  %p1876_p1 = scmp.lt.s32.totalorder %s43_s22, %s43_s22 }
   0x6   :  { %p1877_p2 = scmp.lt.s32.totalorder %s1875_s26, %s1871_s25 }
   0x8   :  { %p1878_p3 = por %p1877_p2, %p1876_p1 }
   0xa   :  { %p1879_p4 = pnand %p1878_p3, %p1872_p0 }
   0xc   :  { %1882 = shalt.err (!%p1879_p4)
}
   0xd   :  { %45 = dma.hbm_to_vmem [thread:$0]  %s2273_s4, 16, %s43_s22, [#allocation6]  }
   0xe   :  { %s1891_s29 = scalar_lea.vmem %s33_s24, 128  ;;  %p1896_p6 = scmp.lt.s32.totalorder %s33_s24, %s33_s24 }
   0xf   :  { %p1892_p5 = scmp.ne.s32.totalorder %s33_s24, %s1891_s29  ;;  %p1897_p7 = scmp.lt.s32.totalorder %s1891_s29, %s1891_s29 }
  0x11   :  { %p1898_p8 = por %p1897_p7, %p1896_p6 }
  0x13   :  { %p1899_p9 = pnand %p1898_p8, %p1892_p5 }
  0x15   :  { %1902 = shalt.err (!%p1899_p9)
}
  0x16   :  { %35 = dma.hbm_to_vmem [thread:$0]  %s2272_s3, 128, %s33_s24, [#allocation3]  }
  0x17   :  { %s1951_s14 = smov [#allocation7]  }
  0x18   :  { %s56_s15 = sshll.u32 %s1951_s14, 4  ;;  %s57_s15 = int_to_ptr.vmem [resolvable:$true] %s56_s15 }
  0x19   :  { %s1911_s16 = scalar_lea.vmem %s57_s15, 128  ;;  %p1916_p11 = scmp.lt.s32.totalorder %s57_s15, %s57_s15 }
  0x1a   :  { %p1912_p10 = scmp.ne.s32.totalorder %s57_s15, %s1911_s16  ;;  %p1917_p12 = scmp.lt.s32.totalorder %s1911_s16, %s1911_s16 }
  0x1c   :  { %p1918_p13 = por %p1917_p12, %p1916_p11 }
  0x1e   :  { %p1919_p0 = pnand %p1918_p13, %p1912_p10 }
  0x20   :  { %1922 = shalt.err (!%p1919_p0)
}
  0x21   :  { %59 = dma.hbm_to_vmem [thread:$0]  %s2276_s7, 128, %s57_s15, [#allocation6]  }
  0x22   :  { %1943 = dma.done.wait [#allocation3], 128  }
  0x23   :  { %1944 = vsyncadd [#allocation3], 4294967168 }
  0x24   :  { %1945 = dma.done.wait [#allocation6], 144  }
  0x25   :  { %1946 = vsyncadd [#allocation6], 4294967152  ;;  %v1952_v0 = vmov 0.0   ;;  %vm1953_vm0 = vmmov 0   ;;  %vm91_vm1 = vcmask 64512   ;;  %v83_v1 = vld [vmem:[%s2271_s2] sm:$0xff] }
  0x26   :  { %1702 = vmatprep.subr.mxu1 %v1952_v0  ;;  %1704 = vmatprep.mubr.msk.f32.mxu1 %vm1953_vm0, %v1952_v0  ;;  %v77_v2 = vld [vmem:[%s2269_s0] sm:$0xff]  ;;  %v78_v3 = vld [vmem:[%s2269_s0 + $0x8] sm:$0xff]  ;;  %v1954_v6 = vmov 0   ;;  %s1956_s23 = smov 32   ;;  %v79_v47 = vld [vmem:[%s2269_s0 + $0x10] sm:$0xff]  ;;  %vm919_vm13 = vcmask 130048  }
  0x27   :  { %1691 = vmatprep.subr.mxu0 %v83_v1  ;;  %1693 = vmatprep.mubr.msk.f32.mxu0 %vm91_vm1, %v77_v2  ;;  %v2045_v4 = vld [vmem:[#allocation2] sm:$0xff]  ;;  %v2067_v10 = vld [vmem:[#allocation5] ss:$0 sm:$0xff]  ;;  %v80_v48 = vld [vmem:[%s2269_s0 + $0x18] sm:$0xff]  ;;  %vm1517_vm15 = vcmask 1040384   ;;  %s1957_s22 = smov [#allocation8]  }
  0x28   :  { %1692 = vmatpush3.msra.mxu0 %v83_v1  ;;  %1703 = vmatpush3.msra.mxu1 %v2045_v4  ;;  %v2061_v5 = vld [vmem:[%s2270_s1] sm:$0xff]  ;;  %s1955_s1 = smov 64   ;;  %s1618_s24 = sshll.u32 %s1957_s22, 4  ;;  %s1619_s24 = int_to_ptr.vmem [resolvable:$true] %s1618_s24 }
  0x29   :  { %1694 = vmatmul.mubr.msk.f32.vlgmr.msra.gmra.mxu0 %vm91_vm1, %v78_v3  ;;  %1705 = vmatmul.mubr.f32.vlgmr.msra.gmra.mxu1 %v1952_v0  ;;  %vm303_vm2 = vcmp.gt.f32.partialorder %v2061_v5, 0.0  ;;  %vm409_vm4 = vcmp.gt.f32.partialorder %v2061_v5, 1.0  ;;  %vm515_vm6 = vcmp.gt.f32.partialorder %v2061_v5, 2.0  ;;  %vm621_vm8 = vcmp.gt.f32.partialorder %v2061_v5, 3.0  ;;  %p1928_p2 = scmp.lt.s32.totalorder %s1619_s24, %s1619_s24 }
  0x2a   :  { %1707 = vmatprep.subr.mxu1 %v1952_v0  ;;  %1709 = vmatprep.mubr.msk.f32.mxu1 %vm1953_vm0, %v1952_v0  ;;  %v304_v7 = vsel %vm303_vm2, 1, %v1954_v6  ;;  %v410_v36 = vsel %vm409_vm4, 1, %v1954_v6  ;;  %v516_v62 = vsel %vm515_vm6, 1, %v1954_v6  ;;  %vm727_vm10 = vcmp.gt.f32.partialorder %v2061_v5, 4.0 }
  0x2b   :  { %1708 = vmatpush3.msra.mxu1 %v2045_v4  ;;  %1717 = vmatprep.subr.mxu0 %v1952_v0  ;;  %vm833_vm12 = vcmp.gt.f32.partialorder %v2061_v5, 5.0  ;;  %vm1523_vm2 = vcmask 1043456  }
  0x2c   :  { %1712 = vmatprep.subr.mxu1 %v1952_v0  ;;  %1718 = vmatpush3.msra.mxu0 %v2045_v4 }
  0x2d   :  { %1727 = vmatprep.subr.mxu0 %v1952_v0  ;;  %1795 = vset.pattern.permute.xlu1 %v1954_v6 }
  0x2e   :  { %1796 = vset.pattern.permute.xlu0 %v1954_v6  ;;  %306 = vperm.xlu1 %1795, %v304_v7  }
  0x2f   :  { %1696 = vmatprep.mubr.msk.f32.mxu0 %vm91_vm1, %v79_v47 }
  0x30   :  { %1697 = vmatmul.mubr.msk.f32.gmra.mxu0 %vm91_vm1, %v80_v48 }
  0xa9   :  { %v307_v26 = vpop.permute.xlu1 %306 }
  0xaa   :  { %vm308_vm3 = vcmp.eq.s32.totalorder %v307_v26, 1 }
  0xe9   :  { %v1695_v8 = vpop.f32.mrf.mxu0  ;;  %v276_v9 = vpop.f32.mrf.mxu1 }
  0xea   :  { %v182_v31 = vadd.f32 %v1695_v8, %v2067_v10 }
  0xeb   :  { %v176_v11 = vpop.f32.mrf.mxu0  ;;  %v1706_v12 = vpop.f32.mrf.mxu1 }
  0xec   :  { %v177_v13 = vadd.f32 %v2067_v10, %v176_v11 }
  0xee   :  { %v280_v14 = vadd.f32 %v276_v9, %v177_v13 }
  0xf0   :  { %1797 = vtanh.f32 %v280_v14  ;;  %v281_v16 = vmul.f32 0.5, %v280_v14  ;;  %v1698_v55 = vpop.f32.mrf.mxu0  ;;  %v81_v14 = vld [vmem:[%s2269_s0 + $0x20] sm:$0xff] }
  0xf1   :  { %1699 = vmatprep.mubr.msk.f32.mxu0 %vm91_vm1, %v81_v14 }
  0xf2   :  { %1799 = vtanh.f32 %v281_v16  ;;  %v186_v56 = vpop.f32.mrf.mxu0 }
  0xf3   :  { %v187_v57 = vadd.f32 %v2067_v10, %v186_v56 }
  0xfd   :  { %v1798_v15 = vpop.eup %1797 }
  0xfe   :  { %288 = vrot.lane.b32.xlu0 %v1798_v15, %s1955_s1  ;;  %v82_v15 = vld [vmem:[%s2269_s0 + $0x28] sm:$0xff] }
  0xff   :  { %v1800_v17 = vpop.eup %1799  ;;  %1700 = vmatmul.mubr.msk.f32.gmra.mxu0 %vm91_vm1, %v82_v15 }
 0x100   :  { %v283_v18 = vmul.f32 0.5, %v1800_v17  ;;  %1719 = vmatprep.mubr.msk.f32.mxu0 %vm1953_vm0, %v1952_v0 }
 0x102   :  { %v284_v19 = vadd.f32 0.5, %v283_v18 }
 0x104   :  { %v286_v22 = vmul.f32 0.0, %v284_v19 }
 0x170   :  { %v289_v20 = vpop.permute.xlu0 %288 }
 0x171   :  { %v291_v21 = vmul.f32 %v289_v20, %v284_v19 }
 0x173   :  { %293 = vrot.lane.b32.xlu0 %v291_v21, %s1956_s23 }
 0x1e5   :  { %v294_v23 = vpop.permute.xlu0 %293 }
 0x1e6   :  { %v296_v24 = vadd.f32 %v294_v23, %v286_v22  ;;  %v2126_v22 = vpop.f32.mrf.mxu0 }
 0x1e8   :  { %1801 = vtanh.f32 %v296_v24  ;;  %v310_v43 = vsel %vm308_vm3, %v296_v24, 0.0  ;;  %v196_v23 = vpop.f32.mrf.mxu0  ;;  %v192_v24 = vadd.f32 %v1698_v55, %v2067_v10 }
 0x1f5   :  { %v1802_v25 = vpop.eup %1801 }
 0x1f6   :  { %299 = vrot.lane.b32.xlu1 %v1802_v25, %s1955_s1 }
 0x268   :  { %v300_v27 = vpop.permute.xlu1 %299 }
 0x269   :  { %v302_v28 = vmul.f32 %v300_v27, %v284_v19 }
 0x26b   :  { %v309_v29 = vsel %vm308_vm3, %v302_v28, 0.0  ;;  %vm1525_vm3 = vcmask 1044480  }
 0x26c   :  { %312 = vrot.lane.b32.xlu0 %v309_v29, %s1956_s23 }
 0x2de   :  { %v313_v30 = vpop.permute.xlu0 %312 }
 0x2df   :  { %1710 = vmatmul.mubr.msk.f32.vlgmr.msra.gmra.mxu1 %vm91_vm1, %v313_v30 }
 0x2e0   :  { %1713 = vmatpush3.msra.mxu1 %v2045_v4  ;;  %1714 = vmatprep.mubr.msk.f32.mxu1 %vm1953_vm0, %v1952_v0 }
 0x2e1   :  { %1722 = vmatprep.subr.mxu1 %v1952_v0 }
 0x39f   :  { %v382_v32 = vpop.f32.mrf.mxu1 }
 0x3a0   :  { %v386_v33 = vadd.f32 %v382_v32, %v182_v31 }
 0x3a1   :  { %v1711_v34 = vpop.f32.mrf.mxu1 }
 0x3a2   :  { %1803 = vtanh.f32 %v386_v33  ;;  %v387_v37 = vmul.f32 0.5, %v386_v33 }
 0x3a4   :  { %1805 = vtanh.f32 %v387_v37 }
 0x3af   :  { %v1804_v35 = vpop.eup %1803 }
 0x3b0   :  { %394 = vrot.lane.b32.xlu1 %v1804_v35, %s1955_s1 }
 0x3b1   :  { %v1806_v38 = vpop.eup %1805 }
 0x3b2   :  { %v389_v39 = vmul.f32 0.5, %v1806_v38 }
 0x3b4   :  { %412 = vperm.xlu1 %1795, %v410_v36   ;;  %v390_v40 = vadd.f32 0.5, %v389_v39 }
 0x3b6   :  { %v392_v44 = vmul.f32 %v390_v40, %v310_v43 }
 0x422   :  { %v395_v41 = vpop.permute.xlu1 %394 }
 0x423   :  { %v397_v42 = vmul.f32 %v395_v41, %v390_v40 }
 0x425   :  { %399 = vrot.lane.b32.xlu0 %v397_v42, %s1956_s23 }
 0x42f   :  { %v413_v50 = vpop.permute.xlu1 %412 }
 0x430   :  { %vm414_vm5 = vcmp.eq.s32.totalorder %v413_v50, 1  ;;  %v728_v50 = vsel %vm727_vm10, 1, %v1954_v6 }
 0x497   :  { %v400_v45 = vpop.permute.xlu0 %399 }
 0x498   :  { %v402_v46 = vadd.f32 %v400_v45, %v392_v44  ;;  %v197_v45 = vadd.f32 %v2067_v10, %v196_v23  ;;  %v841_v23 = vld [vmem:[%s2275_s6] sm:$0xff] }
 0x49a   :  { %1807 = vtanh.f32 %v402_v46  ;;  %v416_v9 = vsel %vm414_vm5, %v402_v46, %v310_v43 }
 0x4a7   :  { %v1808_v49 = vpop.eup %1807 }
 0x4a8   :  { %405 = vrot.lane.b32.xlu0 %v1808_v49, %s1955_s1 }
 0x51a   :  { %v406_v51 = vpop.permute.xlu0 %405 }
 0x51b   :  { %v408_v52 = vmul.f32 %v406_v51, %v390_v40 }
 0x51d   :  { %v415_v53 = vsel %vm414_vm5, %v408_v52, %v309_v29 }
 0x51e   :  { %418 = vrot.lane.b32.xlu1 %v415_v53, %s1956_s23 }
 0x590   :  { %v419_v54 = vpop.permute.xlu1 %418 }
 0x591   :  { %1715 = vmatmul.mubr.msk.f32.vlgmr.msra.gmra.mxu1 %vm91_vm1, %v419_v54 }
 0x592   :  { %1723 = vmatpush3.msra.mxu1 %v2045_v4  ;;  %1724 = vmatprep.mubr.msk.f32.mxu1 %vm1953_vm0, %v1952_v0 }
 0x593   :  { %1732 = vmatprep.subr.mxu1 %v1952_v0 }
 0x651   :  { %v488_v58 = vpop.f32.mrf.mxu1 }
 0x652   :  { %v492_v59 = vadd.f32 %v488_v58, %v187_v57 }
 0x653   :  { %v1716_v60 = vpop.f32.mrf.mxu1 }
 0x654   :  { %1809 = vtanh.f32 %v492_v59  ;;  %v493_v63 = vmul.f32 0.5, %v492_v59 }
 0x656   :  { %1811 = vtanh.f32 %v493_v63 }
 0x661   :  { %v1810_v61 = vpop.eup %1809 }
 0x662   :  { %500 = vrot.lane.b32.xlu0 %v1810_v61, %s1955_s1 }
 0x663   :  { %v1812_v1 = vpop.eup %1811 }
 0x664   :  { %v495_v2 = vmul.f32 0.5, %v1812_v1 }
 0x666   :  { %518 = vperm.xlu0 %1796, %v516_v62   ;;  %v496_v3 = vadd.f32 0.5, %v495_v2 }
 0x668   :  { %v498_v11 = vmul.f32 %v496_v3, %v416_v9 }
 0x6d4   :  { %v501_v7 = vpop.permute.xlu0 %500 }
 0x6d5   :  { %v503_v8 = vmul.f32 %v501_v7, %v496_v3  ;;  %v202_v7 = vadd.f32 %v2126_v22, %v2067_v10  ;;  %v843_v22 = vld [vmem:[#allocation7] sm:$0xff] }
 0x6d7   :  { %505 = vrot.lane.b32.xlu1 %v503_v8, %s1956_s23 }
 0x6e1   :  { %v519_v17 = vpop.permute.xlu0 %518 }
 0x6e2   :  { %vm520_vm7 = vcmp.eq.s32.totalorder %v519_v17, 1 }
 0x749   :  { %v506_v12 = vpop.permute.xlu1 %505 }
 0x74a   :  { %v508_v13 = vadd.f32 %v506_v12, %v498_v11 }
 0x74c   :  { %1813 = vtanh.f32 %v508_v13  ;;  %v522_v35 = vsel %vm520_vm7, %v508_v13, %v416_v9  ;;  %v834_v13 = vsel %vm833_vm12, 1, %v1954_v6 }
 0x759   :  { %v1814_v16 = vpop.eup %1813 }
 0x75a   :  { %511 = vrot.lane.b32.xlu1 %v1814_v16, %s1955_s1 }
 0x7cc   :  { %v512_v18 = vpop.permute.xlu1 %511 }
 0x7cd   :  { %v514_v19 = vmul.f32 %v512_v18, %v496_v3 }
 0x7cf   :  { %v521_v20 = vsel %vm520_vm7, %v514_v19, %v415_v53 }
 0x7d0   :  { %524 = vrot.lane.b32.xlu1 %v521_v20, %s1956_s23 }
 0x842   :  { %v525_v21 = vpop.permute.xlu1 %524 }
 0x843   :  { %1720 = vmatmul.mubr.msk.f32.vlgmr.msra.gmra.mxu0 %vm91_vm1, %v525_v21 }
 0x844   :  { %1728 = vmatpush3.msra.mxu0 %v2045_v4  ;;  %1729 = vmatprep.mubr.msk.f32.mxu0 %vm1953_vm0, %v1952_v0  ;;  %v622_v4 = vsel %vm621_vm8, 1, %v1954_v6  ;;  %v842_v6 = vld [vmem:[%s2275_s6 + $0x8] sm:$0xff] }
 0x845   :  { %1737 = vmatprep.subr.mxu0 %v1952_v0 }
 0x903   :  { %v594_v25 = vpop.f32.mrf.mxu0 }
 0x904   :  { %v598_v26 = vadd.f32 %v594_v25, %v192_v24  ;;  %v840_v24 = vld [vmem:[%s2274_s5] sm:$0xff] }
 0x905   :  { %v1721_v27 = vpop.f32.mrf.mxu0 }
 0x906   :  { %1815 = vtanh.f32 %v598_v26  ;;  %v599_v29 = vmul.f32 0.5, %v598_v26  ;;  %v2178_v26 = vld [vmem:[%s2277_s8 + $0x8] sm:$0xff]  ;;  %v2184_v27 = vld [vmem:[%s2277_s8] sm:$0xff] }
 0x908   :  { %1817 = vtanh.f32 %v599_v29 }
 0x913   :  { %v1816_v28 = vpop.eup %1815 }
 0x914   :  { %606 = vrot.lane.b32.xlu0 %v1816_v28, %s1955_s1 }
 0x915   :  { %v1818_v30 = vpop.eup %1817 }
 0x916   :  { %v601_v31 = vmul.f32 0.5, %v1818_v30 }
 0x918   :  { %624 = vperm.xlu0 %1796, %v622_v4   ;;  %v602_v32 = vadd.f32 0.5, %v601_v31 }
 0x91a   :  { %v604_v36 = vmul.f32 %v602_v32, %v522_v35 }
 0x986   :  { %v607_v33 = vpop.permute.xlu0 %606 }
 0x987   :  { %v609_v34 = vmul.f32 %v607_v33, %v602_v32 }
 0x989   :  { %611 = vrot.lane.b32.xlu1 %v609_v34, %s1956_s23 }
 0x993   :  { %v625_v40 = vpop.permute.xlu0 %624 }
 0x994   :  { %vm626_vm9 = vcmp.eq.s32.totalorder %v625_v40, 1 }
 0x9fb   :  { %v612_v37 = vpop.permute.xlu1 %611 }
 0x9fc   :  { %v614_v38 = vadd.f32 %v612_v37, %v604_v36 }
 0x9fe   :  { %1819 = vtanh.f32 %v614_v38  ;;  %v628_v57 = vsel %vm626_vm9, %v614_v38, %v522_v35  ;;  %v1642_v35 = vld [vmem:[%s2278_s9] ss:$0 sm:$0xff] }
 0xa0b   :  { %v1820_v39 = vpop.eup %1819 }
 0xa0c   :  { %617 = vrot.lane.b32.xlu1 %v1820_v39, %s1955_s1 }
 0xa7e   :  { %v618_v41 = vpop.permute.xlu1 %617 }
 0xa7f   :  { %v620_v42 = vmul.f32 %v618_v41, %v602_v32 }
 0xa81   :  { %v627_v43 = vsel %vm626_vm9, %v620_v42, %v521_v20 }
 0xa82   :  { %630 = vrot.lane.b32.xlu0 %v627_v43, %s1956_s23 }
 0xaf4   :  { %v631_v44 = vpop.permute.xlu0 %630 }
 0xaf5   :  { %1725 = vmatmul.mubr.msk.f32.vlgmr.msra.gmra.mxu1 %vm91_vm1, %v631_v44 }
 0xaf6   :  { %1734 = vmatprep.mubr.msk.f32.mxu1 %vm1953_vm0, %v1952_v0  ;;  %1733 = vmatpush3.msra.mxu1 %v843_v22 }
 0xaf7   :  { %1744 = vmatprep.subr.mxu1 %v1952_v0 }
 0xbb5   :  { %v700_v46 = vpop.f32.mrf.mxu1 }
 0xbb6   :  { %v704_v47 = vadd.f32 %v700_v46, %v197_v45 }
 0xbb7   :  { %v1726_v48 = vpop.f32.mrf.mxu1 }
 0xbb8   :  { %1821 = vtanh.f32 %v704_v47  ;;  %v705_v51 = vmul.f32 0.5, %v704_v47 }
 0xbba   :  { %1823 = vtanh.f32 %v705_v51 }
 0xbc5   :  { %v1822_v49 = vpop.eup %1821 }
 0xbc6   :  { %712 = vrot.lane.b32.xlu1 %v1822_v49, %s1955_s1 }
 0xbc7   :  { %v1824_v52 = vpop.eup %1823 }
 0xbc8   :  { %v707_v53 = vmul.f32 0.5, %v1824_v52 }
 0xbca   :  { %730 = vperm.xlu1 %1795, %v728_v50   ;;  %v708_v54 = vadd.f32 0.5, %v707_v53 }
 0xbcc   :  { %v710_v58 = vmul.f32 %v708_v54, %v628_v57 }
 0xc38   :  { %v713_v55 = vpop.permute.xlu1 %712 }
 0xc39   :  { %v715_v56 = vmul.f32 %v713_v55, %v708_v54 }
 0xc3b   :  { %717 = vrot.lane.b32.xlu0 %v715_v56, %s1956_s23 }
 0xc45   :  { %v731_v62 = vpop.permute.xlu1 %730 }
 0xc46   :  { %vm732_vm11 = vcmp.eq.s32.totalorder %v731_v62, 1 }
 0xcad   :  { %v718_v59 = vpop.permute.xlu0 %717 }
 0xcae   :  { %v720_v60 = vadd.f32 %v718_v59, %v710_v58 }
 0xcb0   :  { %1825 = vtanh.f32 %v720_v60  ;;  %v734_v10 = vsel %vm732_vm11, %v720_v60, %v628_v57 }
 0xcbd   :  { %v1826_v61 = vpop.eup %1825 }
 0xcbe   :  { %723 = vrot.lane.b32.xlu0 %v1826_v61, %s1955_s1 }
 0xd30   :  { %v724_v63 = vpop.permute.xlu0 %723 }
 0xd31   :  { %v726_v1 = vmul.f32 %v724_v63, %v708_v54 }
 0xd33   :  { %v733_v2 = vsel %vm732_vm11, %v726_v1, %v627_v43 }
 0xd34   :  { %736 = vrot.lane.b32.xlu1 %v733_v2, %s1956_s23 }
 0xda6   :  { %v737_v3 = vpop.permute.xlu1 %736 }
 0xda7   :  { %1730 = vmatmul.mubr.msk.f32.vlgmr.msra.gmra.mxu0 %vm91_vm1, %v737_v3 }
 0xda8   :  { %1741 = vmatprep.mubr.msk.f32.mxu0 %vm1953_vm0, %v1952_v0  ;;  %1738 = vmatpush3.msra.mxu0 %v842_v6 }
 0xda9   :  { %1739 = vmatprep.subr.mxu0 %v1952_v0 }
 0xdaa   :  { %1740 = vmatpush3.msra.mxu0 %v841_v23 }
 0xdab   :  { %1742 = vmatmul.mubr.msk.f32.vlgmr.msra.gmra.mxu0 %vm919_vm13, %v840_v24  ;;  %1751 = vmatprep.subr.mxu0 %v1952_v0 }
 0xdac   :  { %1755 = vmatprep.mubr.msk.f32.mxu0 %vm1953_vm0, %v1952_v0  ;;  %1752 = vmatpush3.msra.mxu0 %v2178_v26 }
 0xdad   :  { %1753 = vmatprep.subr.mxu0 %v1952_v0 }
 0xdae   :  { %1754 = vmatpush3.msra.mxu0 %v2184_v27 }
 0xdaf   :  { %1765 = vmatprep.subr.mxu0 %v1952_v0 }
 0xe67   :  { %v806_v8 = vpop.f32.mrf.mxu0 }
 0xe68   :  { %v810_v9 = vadd.f32 %v806_v8, %v202_v7 }
 0xe69   :  { %v1731_v11 = vpop.f32.mrf.mxu0 }
 0xe6a   :  { %1827 = vtanh.f32 %v810_v9  ;;  %v811_v14 = vmul.f32 0.5, %v810_v9 }
 0xe6b   :  { %v989_v31 = vpop.f32.mrf.mxu0 }
 0xe6c   :  { %1829 = vtanh.f32 %v811_v14 }
 0xe6d   :  { %v1743_v32 = vpop.f32.mrf.mxu0 }
 0xe77   :  { %v1828_v12 = vpop.eup %1827 }
 0xe78   :  { %818 = vrot.lane.b32.xlu0 %v1828_v12, %s1955_s1 }
 0xe79   :  { %v1830_v15 = vpop.eup %1829 }
 0xe7a   :  { %v813_v16 = vmul.f32 0.5, %v1830_v15 }
 0xe7c   :  { %836 = vperm.xlu0 %1796, %v834_v13   ;;  %v814_v17 = vadd.f32 0.5, %v813_v16 }
 0xe7e   :  { %v816_v20 = vmul.f32 %v814_v17, %v734_v10 }
 0xeea   :  { %v819_v18 = vpop.permute.xlu0 %818 }
 0xeeb   :  { %v821_v19 = vmul.f32 %v819_v18, %v814_v17 }
 0xeed   :  { %823 = vrot.lane.b32.xlu1 %v821_v19, %s1956_s23 }
 0xef7   :  { %v837_v28 = vpop.permute.xlu0 %836 }
 0xef8   :  { %vm838_vm14 = vcmp.eq.s32.totalorder %v837_v28, 1 }
 0xf5f   :  { %v824_v21 = vpop.permute.xlu1 %823 }
 0xf60   :  { %v826_v5 = vadd.f32 %v824_v21, %v816_v20 }
 0xf62   :  { %1831 = vtanh.f32 %v826_v5 }
 0xf6f   :  { %v1832_v25 = vpop.eup %1831 }
 0xf70   :  { %829 = vrot.lane.b32.xlu1 %v1832_v25, %s1955_s1 }
 0xfe2   :  { %v830_v4 = vpop.permute.xlu1 %829 }
 0xfe3   :  { %v832_v29 = vmul.f32 %v830_v4, %v814_v17 }
 0xfe5   :  { %v839_v30 = vsel %vm838_vm14, %v832_v29, %v733_v2 }
 0xfe6   :  { %845 = vrot.lane.b32.xlu0 %v839_v30, %s1956_s23 }
0x1058   :  { %v846_v33 = vpop.permute.xlu0 %845 }
0x1059   :  { %1735 = vmatmul.mubr.msk.f32.vlgmr.msra.gmra.mxu1 %vm91_vm1, %v846_v33  ;;  %vm1519_vm1 = vcmask 1041408  }
0x105a   :  { %1745 = vmatpush3.msra.mxu1 %v2178_v26  ;;  %1748 = vmatprep.mubr.msk.f32.mxu1 %vm1953_vm0, %v1952_v0 }
0x105b   :  { %1746 = vmatprep.subr.mxu1 %v1952_v0 }
0x105c   :  { %1747 = vmatpush3.msra.mxu1 %v2184_v27 }
0x105d   :  { %1749 = vmatmul.mubr.f32.vlgmr.msra.gmra.mxu1 %v1952_v0  ;;  %1758 = vmatprep.subr.mxu1 %v1952_v0 }
0x105e   :  { %1759 = vmatpush3.msra.mxu1 %v2178_v26  ;;  %1762 = vmatprep.mubr.msk.f32.mxu1 %vm1953_vm0, %v1952_v0 }
0x105f   :  { %1760 = vmatprep.subr.mxu1 %v1952_v0 }
0x1060   :  { %1761 = vmatpush3.msra.mxu1 %v2184_v27 }
0x1061   :  { %1772 = vmatprep.subr.mxu1 %v1952_v0 }
0x1119   :  { %v915_v34 = vpop.f32.mrf.mxu1 }
0x111a   :  { %v990_v36 = vadd.f32 %v989_v31, %v915_v34 }
0x111b   :  { %v1736_v37 = vpop.f32.mrf.mxu1 }
0x111c   :  { %v2207_v38 = vadd.f32 %v1642_v35, %v990_v36 }
0x111d   :  { %v1071_v39 = vpop.f32.mrf.mxu1 }
0x111e   :  { %v1075_v40 = vadd.f32 %v1071_v39, %v2207_v38 }
0x111f   :  { %v1750_v41 = vpop.f32.mrf.mxu1 }
0x1120   :  { %1833 = vtanh.f32 %v1075_v40  ;;  %v1076_v43 = vmul.f32 0.5, %v1075_v40 }
0x1122   :  { %1835 = vtanh.f32 %v1076_v43 }
0x112d   :  { %v1834_v42 = vpop.eup %1833 }
0x112e   :  { %1083 = vrot.lane.b32.xlu1 %v1834_v42, %s1955_s1 }
0x112f   :  { %v1836_v44 = vpop.eup %1835 }
0x1130   :  { %v1078_v45 = vmul.f32 0.5, %v1836_v44 }
0x1132   :  { %v1079_v46 = vadd.f32 0.5, %v1078_v45 }
0x1134   :  { %v1081_v49 = vmul.f32 0.0, %v1079_v46 }
0x11a0   :  { %v1084_v47 = vpop.permute.xlu1 %1083 }
0x11a1   :  { %v1086_v48 = vmul.f32 %v1084_v47, %v1079_v46 }
0x11a3   :  { %1088 = vrot.lane.b32.xlu0 %v1086_v48, %s1956_s23 }
0x1215   :  { %v1089_v50 = vpop.permute.xlu0 %1088 }
0x1216   :  { %v1091_v51 = vadd.f32 %v1089_v50, %v1081_v49 }
0x1218   :  { %1837 = vtanh.f32 %v1091_v51  ;;  %v1183_v7 = vrot.slane %v1091_v51, 7 }
0x1225   :  { %v1838_v52 = vpop.eup %1837 }
0x1226   :  { %1094 = vrot.lane.b32.xlu1 %v1838_v52, %s1955_s1 }
0x1298   :  { %v1095_v53 = vpop.permute.xlu1 %1094 }
0x1299   :  { %v2213_v54 = vmul.f32 %v1095_v53, %v1079_v46 }
0x129b   :  { %1099 = vrot.lane.b32.xlu0 %v2213_v54, %s1956_s23 }
0x130d   :  { %v1100_v55 = vpop.permute.xlu0 %1099 }
0x130e   :  { %1756 = vmatmul.mubr.msk.f32.vlgmr.msra.gmra.mxu0 %vm919_vm13, %v1100_v55 }
0x130f   :  { %1766 = vmatpush3.msra.mxu0 %v2178_v26  ;;  %1769 = vmatprep.mubr.msk.f32.mxu0 %vm1953_vm0, %v1952_v0 }
0x1310   :  { %1767 = vmatprep.subr.mxu0 %v1952_v0 }
0x1311   :  { %1768 = vmatpush3.msra.mxu0 %v2184_v27 }
0x1312   :  { %1779 = vmatprep.subr.mxu0 %v1952_v0 }
0x13ce   :  { %v1169_v56 = vpop.f32.mrf.mxu0 }
0x13cf   :  { %v1174_v57 = vrot.slane %v1169_v56, 7 }
0x13d0   :  { %v1757_v58 = vpop.f32.mrf.mxu0 }
0x13d1   :  { %v1176_v59 = vadd.f32 %v1174_v57, %v2207_v38 }
0x13d3   :  { %1839 = vtanh.f32 %v1176_v59  ;;  %v1177_v61 = vmul.f32 0.5, %v1176_v59 }
0x13d5   :  { %1841 = vtanh.f32 %v1177_v61 }
0x13e0   :  { %v1840_v60 = vpop.eup %1839 }
0x13e1   :  { %1187 = vrot.lane.b32.xlu1 %v1840_v60, %s1955_s1 }
0x13e2   :  { %v1842_v62 = vpop.eup %1841 }
0x13e3   :  { %v1179_v63 = vmul.f32 0.5, %v1842_v62 }
0x13e5   :  { %v1180_v1 = vadd.f32 0.5, %v1179_v63 }
0x13e7   :  { %v1185_v8 = vmul.f32 %v1183_v7, %v1180_v1 }
0x1453   :  { %v1188_v2 = vpop.permute.xlu1 %1187 }
0x1454   :  { %v1190_v3 = vmul.f32 %v1188_v2, %v1180_v1 }
0x1456   :  { %1192 = vrot.lane.b32.xlu0 %v1190_v3, %s1956_s23 }
0x14c8   :  { %v1193_v9 = vpop.permute.xlu0 %1192 }
0x14c9   :  { %v1195_v11 = vadd.f32 %v1193_v9, %v1185_v8 }
0x14cb   :  { %1843 = vtanh.f32 %v1195_v11  ;;  %v1288_v25 = vrot.slane %v1195_v11, 7 }
0x14d8   :  { %v1844_v12 = vpop.eup %1843 }
0x14d9   :  { %1198 = vrot.lane.b32.xlu1 %v1844_v12, %s1955_s1 }
0x154b   :  { %v1199_v13 = vpop.permute.xlu1 %1198 }
0x154c   :  { %v1201_v14 = vmul.f32 %v1199_v13, %v1180_v1  ;;  %v1527_v13 = vld [vmem:[%s2279_s10] sm:$0xff] }
0x154e   :  { %v1203_v15 = vrot.slane %v1201_v14, 1  ;;  %v1518_v31 = vsel %vm1517_vm15, %v2213_v54, %v1201_v14 }
0x1550   :  { %1204 = vrot.lane.b32.xlu0 %v1203_v15, %s1956_s23 }
0x15c2   :  { %v1205_v16 = vpop.permute.xlu0 %1204 }
0x15c3   :  { %1763 = vmatmul.mubr.msk.f32.vlgmr.msra.gmra.mxu1 %vm919_vm13, %v1205_v16 }
0x15c4   :  { %1773 = vmatpush3.msra.mxu1 %v2178_v26  ;;  %1776 = vmatprep.mubr.msk.f32.mxu1 %vm1953_vm0, %v1952_v0 }
0x15c5   :  { %1774 = vmatprep.subr.mxu1 %v1952_v0 }
0x15c6   :  { %1775 = vmatpush3.msra.mxu1 %v2184_v27 }
0x1683   :  { %v1274_v17 = vpop.f32.mrf.mxu1 }
0x1684   :  { %v1279_v18 = vrot.slane %v1274_v17, 6 }
0x1685   :  { %v1764_v19 = vpop.f32.mrf.mxu1 }
0x1686   :  { %v1281_v10 = vadd.f32 %v1279_v18, %v2207_v38 }
0x1688   :  { %1845 = vtanh.f32 %v1281_v10  ;;  %v1282_v21 = vmul.f32 0.5, %v1281_v10  ;;  %v1647_v10 = vld [vmem:[%s2280_s11] ss:$0 sm:$0xff] }
0x168a   :  { %1847 = vtanh.f32 %v1282_v21 }
0x1695   :  { %v1846_v20 = vpop.eup %1845 }
0x1696   :  { %1292 = vrot.lane.b32.xlu1 %v1846_v20, %s1955_s1 }
0x1697   :  { %v1848_v5 = vpop.eup %1847 }
0x1698   :  { %v1284_v6 = vmul.f32 0.5, %v1848_v5 }
0x169a   :  { %v1285_v22 = vadd.f32 0.5, %v1284_v6 }
0x169c   :  { %v1290_v26 = vmul.f32 %v1288_v25, %v1285_v22 }
0x1708   :  { %v1293_v23 = vpop.permute.xlu1 %1292 }
0x1709   :  { %v1295_v24 = vmul.f32 %v1293_v23, %v1285_v22 }
0x170b   :  { %1297 = vrot.lane.b32.xlu0 %v1295_v24, %s1956_s23 }
0x177d   :  { %v1298_v27 = vpop.permute.xlu0 %1297 }
0x177e   :  { %v1300_v28 = vadd.f32 %v1298_v27, %v1290_v26 }
0x1780   :  { %1849 = vtanh.f32 %v1300_v28  ;;  %v1393_v47 = vrot.slane %v1300_v28, 7 }
0x178d   :  { %v1850_v4 = vpop.eup %1849 }
0x178e   :  { %1303 = vrot.lane.b32.xlu1 %v1850_v4, %s1955_s1 }
0x1800   :  { %v1304_v29 = vpop.permute.xlu1 %1303 }
0x1801   :  { %v1306_v30 = vmul.f32 %v1304_v29, %v1285_v22 }
0x1803   :  { %v1308_v32 = vrot.slane %v1306_v30, 2  ;;  %v1520_v33 = vsel %vm1519_vm1, %v1518_v31, %v1306_v30 }
0x1805   :  { %1309 = vrot.lane.b32.xlu0 %v1308_v32, %s1956_s23 }
0x1877   :  { %v1310_v34 = vpop.permute.xlu0 %1309 }
0x1878   :  { %1770 = vmatmul.mubr.msk.f32.vlgmr.msra.gmra.mxu0 %vm919_vm13, %v1310_v34 }
0x1879   :  { %1783 = vmatprep.mubr.msk.f32.mxu0 %vm1953_vm0, %v1952_v0  ;;  %vm1521_vm0 = vcmask 1042432  }
0x1938   :  { %v1379_v35 = vpop.f32.mrf.mxu0 }
0x1939   :  { %v1384_v36 = vrot.slane %v1379_v35, 5 }
0x193a   :  { %v1771_v37 = vpop.f32.mrf.mxu0 }
0x193b   :  { %v1386_v39 = vadd.f32 %v1384_v36, %v2207_v38 }
0x193d   :  { %1851 = vtanh.f32 %v1386_v39  ;;  %v1387_v41 = vmul.f32 0.5, %v1386_v39 }
0x193f   :  { %1853 = vtanh.f32 %v1387_v41 }
0x194a   :  { %v1852_v40 = vpop.eup %1851 }
0x194b   :  { %1397 = vrot.lane.b32.xlu1 %v1852_v40, %s1955_s1 }
0x194c   :  { %v1854_v42 = vpop.eup %1853 }
0x194d   :  { %v1389_v43 = vmul.f32 0.5, %v1854_v42 }
0x194f   :  { %v1390_v44 = vadd.f32 0.5, %v1389_v43 }
0x1951   :  { %v1395_v48 = vmul.f32 %v1393_v47, %v1390_v44 }
0x19bd   :  { %v1398_v45 = vpop.permute.xlu1 %1397 }
0x19be   :  { %v1400_v46 = vmul.f32 %v1398_v45, %v1390_v44 }
0x19c0   :  { %1402 = vrot.lane.b32.xlu0 %v1400_v46, %s1956_s23 }
0x1a32   :  { %v1403_v49 = vpop.permute.xlu0 %1402 }
0x1a33   :  { %v1405_v50 = vadd.f32 %v1403_v49, %v1395_v48 }
0x1a35   :  { %1855 = vtanh.f32 %v1405_v50  ;;  %v1498_v8 = vrot.slane %v1405_v50, 7 }
0x1a42   :  { %v1856_v51 = vpop.eup %1855 }
0x1a43   :  { %1408 = vrot.lane.b32.xlu1 %v1856_v51, %s1955_s1 }
0x1ab5   :  { %v1409_v52 = vpop.permute.xlu1 %1408 }
0x1ab6   :  { %v1411_v53 = vmul.f32 %v1409_v52, %v1390_v44 }
0x1ab8   :  { %v1413_v54 = vrot.slane %v1411_v53, 3  ;;  %v1522_v55 = vsel %vm1521_vm0, %v1520_v33, %v1411_v53 }
0x1aba   :  { %1414 = vrot.lane.b32.xlu0 %v1413_v54, %s1956_s23 }
0x1b2c   :  { %v1415_v56 = vpop.permute.xlu0 %1414 }
0x1b2d   :  { %1777 = vmatmul.mubr.msk.f32.vlgmr.msra.gmra.mxu1 %vm919_vm13, %v1415_v56 }
0x1bed   :  { %v1484_v57 = vpop.f32.mrf.mxu1 }
0x1bee   :  { %v1489_v58 = vrot.slane %v1484_v57, 4 }
0x1bef   :  { %v1778_v59 = vpop.f32.mrf.mxu1 }
0x1bf0   :  { %v1491_v60 = vadd.f32 %v1489_v58, %v2207_v38  ;;  %v1528_v38 = vld [vmem:[%s2279_s10 + $0x8] sm:$0xff] }
0x1bf1   :  { %1780 = vmatpush3.msra.mxu0 %v1528_v38 }
0x1bf2   :  { %1857 = vtanh.f32 %v1491_v60  ;;  %v1492_v62 = vmul.f32 0.5, %v1491_v60  ;;  %1781 = vmatprep.subr.mxu0 %v1952_v0 }
0x1bf3   :  { %1782 = vmatpush3.msra.mxu0 %v1527_v13 }
0x1bf4   :  { %1859 = vtanh.f32 %v1492_v62 }
0x1bff   :  { %v1858_v61 = vpop.eup %1857 }
0x1c00   :  { %1502 = vrot.lane.b32.xlu1 %v1858_v61, %s1955_s1 }
0x1c01   :  { %v1860_v63 = vpop.eup %1859 }
0x1c02   :  { %v1494_v1 = vmul.f32 0.5, %v1860_v63 }
0x1c04   :  { %v1495_v2 = vadd.f32 0.5, %v1494_v1 }
0x1c06   :  { %v1500_v9 = vmul.f32 %v1498_v8, %v1495_v2 }
0x1c72   :  { %v1503_v3 = vpop.permute.xlu1 %1502 }
0x1c73   :  { %v1505_v7 = vmul.f32 %v1503_v3, %v1495_v2 }
0x1c75   :  { %1507 = vrot.lane.b32.xlu0 %v1505_v7, %s1956_s23 }
0x1ce7   :  { %v1508_v11 = vpop.permute.xlu0 %1507 }
0x1ce8   :  { %v1510_v12 = vadd.f32 %v1508_v11, %v1500_v9 }
0x1cea   :  { %1861 = vtanh.f32 %v1510_v12 }
0x1cf7   :  { %v1862_v14 = vpop.eup %1861 }
0x1cf8   :  { %1513 = vrot.lane.b32.xlu1 %v1862_v14, %s1955_s1  ;;  %s1923_s1 = scalar_lea.vmem %s1619_s24, 128 }
0x1cf9   :  { %p1924_p1 = scmp.ne.s32.totalorder %s1619_s24, %s1923_s1  ;;  %p1929_p3 = scmp.lt.s32.totalorder %s1923_s1, %s1923_s1 }
0x1cfb   :  { %p1930_p4 = por %p1929_p3, %p1928_p2 }
0x1cfd   :  { %p1931_p5 = pnand %p1930_p4, %p1924_p1 }
0x1d6a   :  { %v1514_v15 = vpop.permute.xlu1 %1513 }
0x1d6b   :  { %v1516_v16 = vmul.f32 %v1514_v15, %v1495_v2 }
0x1d6d   :  { %v1524_v17 = vsel %vm1523_vm2, %v1522_v55, %v1516_v16 }
0x1d6e   :  { %v1526_v18 = vsel %vm1525_vm3, %v1524_v17, 0.0 }
0x1d6f   :  { %1537 = vrot.lane.b32.xlu0 %v1526_v18, %s1956_s23 }
0x1de1   :  { %v1538_v19 = vpop.permute.xlu0 %1537 }
0x1de2   :  { %1784 = vmatmul.mubr.msk.f32.vlgmr.msra.gmra.mxu0 %vm919_vm13, %v1538_v19 }
0x1ea2   :  { %v1607_v0 = vpop.f32.mrf.mxu0 }
0x1ea3   :  { %v1608_v20 = vadd.f32 %v1647_v10, %v1607_v0 }
0x1ea4   :  { %v1785_v21 = vpop.f32.mrf.mxu0 }
0x1ea5   :  { %1611 = vst [vmem:[#allocation8] sm:$0xff] %v1608_v20 }
0x1ea6   :  { %1934 = shalt.err (!%p1931_p5)
}
0x1ea7   :  { %1621 = dma.vmem_to_hbm [thread:$0]  %s1619_s24, 128, %s2281_s12, [#allocation4]  }
0x1ea8   :  { %1947 = dma.done.wait [#allocation4], 128  }
0x1ea9   :  { %1948 = vsyncadd [#allocation4], 4294967168 }
0x1eaa   :  { %1625 = vsyncpa [#allocation3], 1 }
0x1eab   :  { %1626 = vsyncpa [#allocation6], 1 }
0x1eac   :  { %1627 = vsyncpa [#allocation4], 1 }

</bundles_post_ra>
